<compile_context>
chip_gen: v7x
topology: tpu7x:2x2x1
jax: 0.10.0
libtpu: 0.0.40
codegen_flags: <defaults>
</compile_context>

<pallas_src>
import jax
import jax.numpy as jnp
from jax.experimental import pallas as pl
from jax.experimental.pallas import tpu as pltpu


# -----------------------------------------------------------------------------
# Fused Generator kernel: stacked LSTM recurrence + fc + sigmoid in one call.
# -----------------------------------------------------------------------------
def make_generator_kernel(n_layers, seq_len, hidden_dim, output_dim):
    H = hidden_dim
    T = seq_len
    O = output_dim

    def kernel(*refs):
        # inputs: x, h0, c0, (W_l, b_l) * n_layers, w_fc, b_fc
        # outputs: pred (B, T*O), h_n (L, B, H), c_n (L, B, H)
        x_ref, h0_ref, c0_ref = refs[0], refs[1], refs[2]
        w_refs = refs[3:3 + 2 * n_layers]
        wfc_ref = refs[3 + 2 * n_layers]
        bfc_ref = refs[4 + 2 * n_layers]
        pred_ref = refs[5 + 2 * n_layers]
        hn_ref = refs[6 + 2 * n_layers]
        cn_ref = refs[7 + 2 * n_layers]

        B = x_ref.shape[0]

        # ---- hoist weight loads & bias broadcasts out of the time loop ------
        Ws, bs = [], []
        for l in range(n_layers):
            Ws.append(w_refs[2 * l][...])                                  # (D_l + H, 4H)
            bs.append(jnp.broadcast_to(w_refs[2 * l + 1][...], (B, 4 * H)))
        wfc = wfc_ref[...]                                                 # (H, O)
        bfc = jnp.broadcast_to(bfc_ref[...], (B, O))

        hs = [h0_ref[l] for l in range(n_layers)]                          # (B, H) each
        cs = [c0_ref[l] for l in range(n_layers)]

        preds = []
        # Static unroll over the (small, static) sequence length.  The LSTM
        # recurrence is inherently sequential, so there is no grid over time.
        for t in range(T):
            layer_in = x_ref[:, t, :]                                      # (B, D_in)
            for l in range(n_layers):
                # single fused matmul: [x_t, h] @ [W_ih^T ; W_hh^T]
                zin = jnp.concatenate([layer_in, hs[l]], axis=-1)          # (B, D_l + H)
                gates = jnp.dot(zin, Ws[l],
                                preferred_element_type=jnp.float32) + bs[l]  # (B, 4H)
                i = jax.nn.sigmoid(gates[:, 0:H])
                f = jax.nn.sigmoid(gates[:, H:2 * H])
                g = jnp.tanh(gates[:, 2 * H:3 * H])
                o = jax.nn.sigmoid(gates[:, 3 * H:4 * H])
                c = f * cs[l] + i * g
                h = o * jnp.tanh(c)
                cs[l], hs[l] = c, h
                layer_in = h
            # fused fc + sigmoid head on the last layer's hidden state
            preds.append(jax.nn.sigmoid(
                jnp.dot(layer_in, wfc, preferred_element_type=jnp.float32) + bfc))

        # single lane-dense store of the whole prediction sequence
        pred_ref[...] = jnp.concatenate(preds, axis=-1)                    # (B, T*O)
        for l in range(n_layers):
            hn_ref[l] = hs[l]
            cn_ref[l] = cs[l]

    return kernel


# -----------------------------------------------------------------------------
# Generator (parameters initialized deterministically in-script)
# -----------------------------------------------------------------------------
class GeneratorPallas:
    def __init__(self, input_dim, output_dim, hidden_dim, n_layers, key):
        self.input_dim = input_dim
        self.output_dim = output_dim
        self.hidden_dim = hidden_dim
        self.n_layers = n_layers

        H = hidden_dim
        k = 1.0 / jnp.sqrt(H)
        keys = jax.random.split(key, 4 * n_layers + 2)

        self.w_stacked, self.bias = [], []
        for l in range(n_layers):
            d_in = input_dim if l == 0 else hidden_dim
            wih = jax.random.uniform(keys[4 * l + 0], (4 * H, d_in), jnp.float32, -k, k)
            whh = jax.random.uniform(keys[4 * l + 1], (4 * H, H), jnp.float32, -k, k)
            bih = jax.random.uniform(keys[4 * l + 2], (4 * H,), jnp.float32, -k, k)
            bhh = jax.random.uniform(keys[4 * l + 3], (4 * H,), jnp.float32, -k, k)
            # pre-stack [W_ih^T ; W_hh^T] -> (d_in + H, 4H): one MXU push per step.
            self.w_stacked.append(jnp.concatenate([wih.T, whh.T], axis=0))
            self.bias.append((bih + bhh).reshape(1, 4 * H))                # (1, 4H)

        # fc_out: xavier_uniform weight (output_dim, hidden_dim), default bias
        limit = jnp.sqrt(6.0 / (hidden_dim + output_dim))
        w_fc = jax.random.uniform(keys[-2], (output_dim, hidden_dim),
                                  jnp.float32, -limit, limit)
        self.w_fc_t = w_fc.T                                               # (H, O)
        self.b_fc = jax.random.uniform(keys[-1], (1, output_dim), jnp.float32, -k, k)

    def init_hidden(self, batch_size):
        z = jnp.zeros((self.n_layers, batch_size, self.hidden_dim), jnp.float32)
        return (z, z)

    def forward(self, inp, hidden):
        """inp: (B, T, input_dim) batch_first; hidden: (h0, c0) each (n_layers, B, H)."""
        h0, c0 = hidden
        B, T, _ = inp.shape
        H, O, L = self.hidden_dim, self.output_dim, self.n_layers

        kernel = make_generator_kernel(L, T, H, O)
        args = [inp, h0, c0]
        for l in range(L):
            args += [self.w_stacked[l], self.bias[l]]
        args += [self.w_fc_t, self.b_fc]

        vmem = pl.BlockSpec(memory_space=pltpu.MemorySpace.VMEM)
        pred2d, h_n, c_n = pl.pallas_call(
            kernel,
            out_shape=(
                jax.ShapeDtypeStruct((B, T * O), jnp.float32),
                jax.ShapeDtypeStruct((L, B, H), jnp.float32),
                jax.ShapeDtypeStruct((L, B, H), jnp.float32),
            ),
            in_specs=[vmem] * len(args),
            out_specs=(vmem, vmem, vmem),
        )(*args)

        # contiguity-preserving (free) reshape back to (B, T, O), batch_first
        pred = pred2d.reshape(B, T, O)
        return pred, (h_n, c_n)


# -----------------------------------------------------------------------------
# Pure-JAX reference (same math) for a correctness check
# -----------------------------------------------------------------------------
def reference_forward(model, inp, hidden):
    h0, c0 = hidden
    H = model.hidden_dim
    B, T, _ = inp.shape
    x = inp
    hs, cs = [], []
    for l in range(model.n_layers):
        h, c = h0[l], c0[l]
        W = model.w_stacked[l]
        b = model.bias[l][0]
        outs = []
        for t in range(T):
            z = jnp.concatenate([x[:, t, :], h], axis=-1)
            g = z @ W + b
            i = jax.nn.sigmoid(g[:, :H])
            f = jax.nn.sigmoid(g[:, H:2 * H])
            gg = jnp.tanh(g[:, 2 * H:3 * H])
            o = jax.nn.sigmoid(g[:, 3 * H:])
            c = f * c + i * gg
            h = o * jnp.tanh(c)
            outs.append(h)
        x = jnp.stack(outs, axis=1)
        hs.append(h)
        cs.append(c)
    pred = jax.nn.sigmoid(x @ model.w_fc_t + model.b_fc[0])
    return pred, (jnp.stack(hs), jnp.stack(cs))


if __name__ == "__main__":
    input_dim, output_dim, hidden_dim, n_layers = 16, 8, 32, 2
    batch, seq = 2, 8

    key = jax.random.PRNGKey(0)
    k_param, k_data = jax.random.split(key)

    model = GeneratorPallas(input_dim, output_dim, hidden_dim, n_layers, k_param)
    x = jax.random.normal(k_data, (batch, seq, input_dim), jnp.float32)
    hidden = model.init_hidden(batch)

    pred, (h_n, c_n) = model.forward(x, hidden)
    jax.block_until_ready((pred, h_n, c_n))

    ref_pred, (ref_h, ref_c) = reference_forward(model, x, hidden)
    assert pred.shape == (batch, seq, output_dim)
    assert h_n.shape == (n_layers, batch, hidden_dim)
    assert c_n.shape == (n_layers, batch, hidden_dim)
    assert jnp.allclose(pred, ref_pred, atol=1e-5)
    assert jnp.allclose(h_n, ref_h, atol=1e-5)
    assert jnp.allclose(c_n, ref_c, atol=1e-5)

    print("KERNEL_OK")
</pallas_src>

<mosaic_0001>
module attributes {stable_mosaic.version = 11 : i64} {
  func.func @kernel(%arg0: memref<2x8x16xf32, #tpu.memory_space<vmem>>, %arg1: memref<2x2x32xf32, #tpu.memory_space<vmem>>, %arg2: memref<2x2x32xf32, #tpu.memory_space<vmem>>, %arg3: memref<48x128xf32, #tpu.memory_space<vmem>>, %arg4: memref<1x128xf32, #tpu.memory_space<vmem>>, %arg5: memref<64x128xf32, #tpu.memory_space<vmem>>, %arg6: memref<1x128xf32, #tpu.memory_space<vmem>>, %arg7: memref<32x8xf32, #tpu.memory_space<vmem>>, %arg8: memref<1x8xf32, #tpu.memory_space<vmem>>, %arg9: memref<2x64xf32, #tpu.memory_space<vmem>>, %arg10: memref<2x2x32xf32, #tpu.memory_space<vmem>>, %arg11: memref<2x2x32xf32, #tpu.memory_space<vmem>>) attributes {dimension_semantics = [], scalar_prefetch = 0 : i64, scratch_operands = 0 : i64, tpu.core_type = #tpu.core_type<tc>} {
    %c0 = arith.constant 0 : index
    %c0_0 = arith.constant 0 : index
    %0 = vector.load %arg3[%c0, %c0_0] : memref<48x128xf32, #tpu.memory_space<vmem>>, vector<48x128xf32>
    %c0_1 = arith.constant 0 : index
    %c0_2 = arith.constant 0 : index
    %1 = vector.load %arg4[%c0_1, %c0_2] : memref<1x128xf32, #tpu.memory_space<vmem>>, vector<1x128xf32>
    %2 = vector.shape_cast %1 : vector<1x128xf32> to vector<1x128xf32>
    %3 = vector.broadcast %2 : vector<1x128xf32> to vector<2x128xf32>
    %c0_3 = arith.constant 0 : index
    %c0_4 = arith.constant 0 : index
    %4 = vector.load %arg5[%c0_3, %c0_4] : memref<64x128xf32, #tpu.memory_space<vmem>>, vector<64x128xf32>
    %c0_5 = arith.constant 0 : index
    %c0_6 = arith.constant 0 : index
    %5 = vector.load %arg6[%c0_5, %c0_6] : memref<1x128xf32, #tpu.memory_space<vmem>>, vector<1x128xf32>
    %6 = vector.shape_cast %5 : vector<1x128xf32> to vector<1x128xf32>
    %7 = vector.broadcast %6 : vector<1x128xf32> to vector<2x128xf32>
    %c0_7 = arith.constant 0 : index
    %c0_8 = arith.constant 0 : index
    %8 = vector.load %arg7[%c0_7, %c0_8] : memref<32x8xf32, #tpu.memory_space<vmem>>, vector<32x8xf32>
    %c0_9 = arith.constant 0 : index
    %c0_10 = arith.constant 0 : index
    %9 = vector.load %arg8[%c0_9, %c0_10] : memref<1x8xf32, #tpu.memory_space<vmem>>, vector<1x8xf32>
    %10 = vector.shape_cast %9 : vector<1x8xf32> to vector<1x8xf32>
    %11 = vector.broadcast %10 : vector<1x8xf32> to vector<2x8xf32>
    %c0_11 = arith.constant 0 : index
    %c0_12 = arith.constant 0 : index
    %c0_13 = arith.constant 0 : index
    %12 = vector.load %arg1[%c0_11, %c0_12, %c0_13] : memref<2x2x32xf32, #tpu.memory_space<vmem>>, vector<1x2x32xf32>
    %13 = vector.shape_cast %12 : vector<1x2x32xf32> to vector<2x32xf32>
    %c1 = arith.constant 1 : index
    %c0_14 = arith.constant 0 : index
    %c0_15 = arith.constant 0 : index
    %14 = vector.load %arg1[%c1, %c0_14, %c0_15] : memref<2x2x32xf32, #tpu.memory_space<vmem>>, vector<1x2x32xf32>
    %15 = vector.shape_cast %14 : vector<1x2x32xf32> to vector<2x32xf32>
    %c0_16 = arith.constant 0 : index
    %c0_17 = arith.constant 0 : index
    %c0_18 = arith.constant 0 : index
    %16 = vector.load %arg2[%c0_16, %c0_17, %c0_18] : memref<2x2x32xf32, #tpu.memory_space<vmem>>, vector<1x2x32xf32>
    %17 = vector.shape_cast %16 : vector<1x2x32xf32> to vector<2x32xf32>
    %c1_19 = arith.constant 1 : index
    %c0_20 = arith.constant 0 : index
    %c0_21 = arith.constant 0 : index
    %18 = vector.load %arg2[%c1_19, %c0_20, %c0_21] : memref<2x2x32xf32, #tpu.memory_space<vmem>>, vector<1x2x32xf32>
    %19 = vector.shape_cast %18 : vector<1x2x32xf32> to vector<2x32xf32>
    %c0_22 = arith.constant 0 : index
    %c0_23 = arith.constant 0 : index
    %c0_24 = arith.constant 0 : index
    %20 = vector.load %arg0[%c0_22, %c0_23, %c0_24] : memref<2x8x16xf32, #tpu.memory_space<vmem>>, vector<2x1x16xf32>
    %21 = vector.shape_cast %20 : vector<2x1x16xf32> to vector<2x16xf32>
    %22 = tpu.concatenate %21, %13 in 1 : vector<2x16xf32>, vector<2x32xf32> -> vector<2x48xf32>
    %cst = arith.constant dense<0.000000e+00> : vector<2x128xf32>
    %23 = tpu.matmul %22, %0, %cst {dimension_numbers = #tpu.dot_dimension_numbers<[1], [0], [0], [1], [0, 0, 1, 1], [], []>} : vector<2x48xf32>, vector<48x128xf32>, vector<2x128xf32> -> vector<2x128xf32>
    %24 = arith.addf %23, %3 : vector<2x128xf32>
    %25 = vector.extract_strided_slice %24 {offsets = [0, 0], sizes = [2, 32], strides = [1, 1]} : vector<2x128xf32> to vector<2x32xf32>
    %26 = arith.negf %25 : vector<2x32xf32>
    %27 = math.exp %26 : vector<2x32xf32>
    %cst_25 = arith.constant 1.000000e+00 : f32
    %28 = vector.broadcast %cst_25 : f32 to vector<2x32xf32>
    %29 = arith.addf %28, %27 : vector<2x32xf32>
    %30 = arith.divf %28, %29 : vector<2x32xf32>
    %31 = vector.extract_strided_slice %24 {offsets = [0, 32], sizes = [2, 32], strides = [1, 1]} : vector<2x128xf32> to vector<2x32xf32>
    %32 = arith.negf %31 : vector<2x32xf32>
    %33 = math.exp %32 : vector<2x32xf32>
    %cst_26 = arith.constant 1.000000e+00 : f32
    %34 = vector.broadcast %cst_26 : f32 to vector<2x32xf32>
    %35 = arith.addf %34, %33 : vector<2x32xf32>
    %36 = arith.divf %34, %35 : vector<2x32xf32>
    %37 = vector.extract_strided_slice %24 {offsets = [0, 64], sizes = [2, 32], strides = [1, 1]} : vector<2x128xf32> to vector<2x32xf32>
    %38 = math.tanh %37 : vector<2x32xf32>
    %39 = vector.extract_strided_slice %24 {offsets = [0, 96], sizes = [2, 32], strides = [1, 1]} : vector<2x128xf32> to vector<2x32xf32>
    %40 = arith.negf %39 : vector<2x32xf32>
    %41 = math.exp %40 : vector<2x32xf32>
    %cst_27 = arith.constant 1.000000e+00 : f32
    %42 = vector.broadcast %cst_27 : f32 to vector<2x32xf32>
    %43 = arith.addf %42, %41 : vector<2x32xf32>
    %44 = arith.divf %42, %43 : vector<2x32xf32>
    %45 = arith.mulf %36, %17 : vector<2x32xf32>
    %46 = arith.mulf %30, %38 : vector<2x32xf32>
    %47 = arith.addf %45, %46 : vector<2x32xf32>
    %48 = math.tanh %47 : vector<2x32xf32>
    %49 = arith.mulf %44, %48 : vector<2x32xf32>
    %50 = tpu.concatenate %49, %15 in 1 : vector<2x32xf32>, vector<2x32xf32> -> vector<2x64xf32>
    %cst_28 = arith.constant dense<0.000000e+00> : vector<2x128xf32>
    %51 = tpu.matmul %50, %4, %cst_28 {dimension_numbers = #tpu.dot_dimension_numbers<[1], [0], [0], [1], [0, 0, 1, 1], [], []>} : vector<2x64xf32>, vector<64x128xf32>, vector<2x128xf32> -> vector<2x128xf32>
    %52 = arith.addf %51, %7 : vector<2x128xf32>
    %53 = vector.extract_strided_slice %52 {offsets = [0, 0], sizes = [2, 32], strides = [1, 1]} : vector<2x128xf32> to vector<2x32xf32>
    %54 = arith.negf %53 : vector<2x32xf32>
    %55 = math.exp %54 : vector<2x32xf32>
    %cst_29 = arith.constant 1.000000e+00 : f32
    %56 = vector.broadcast %cst_29 : f32 to vector<2x32xf32>
    %57 = arith.addf %56, %55 : vector<2x32xf32>
    %58 = arith.divf %56, %57 : vector<2x32xf32>
    %59 = vector.extract_strided_slice %52 {offsets = [0, 32], sizes = [2, 32], strides = [1, 1]} : vector<2x128xf32> to vector<2x32xf32>
    %60 = arith.negf %59 : vector<2x32xf32>
    %61 = math.exp %60 : vector<2x32xf32>
    %cst_30 = arith.constant 1.000000e+00 : f32
    %62 = vector.broadcast %cst_30 : f32 to vector<2x32xf32>
    %63 = arith.addf %62, %61 : vector<2x32xf32>
    %64 = arith.divf %62, %63 : vector<2x32xf32>
    %65 = vector.extract_strided_slice %52 {offsets = [0, 64], sizes = [2, 32], strides = [1, 1]} : vector<2x128xf32> to vector<2x32xf32>
    %66 = math.tanh %65 : vector<2x32xf32>
    %67 = vector.extract_strided_slice %52 {offsets = [0, 96], sizes = [2, 32], strides = [1, 1]} : vector<2x128xf32> to vector<2x32xf32>
    %68 = arith.negf %67 : vector<2x32xf32>
    %69 = math.exp %68 : vector<2x32xf32>
    %cst_31 = arith.constant 1.000000e+00 : f32
    %70 = vector.broadcast %cst_31 : f32 to vector<2x32xf32>
    %71 = arith.addf %70, %69 : vector<2x32xf32>
    %72 = arith.divf %70, %71 : vector<2x32xf32>
    %73 = arith.mulf %64, %19 : vector<2x32xf32>
    %74 = arith.mulf %58, %66 : vector<2x32xf32>
    %75 = arith.addf %73, %74 : vector<2x32xf32>
    %76 = math.tanh %75 : vector<2x32xf32>
    %77 = arith.mulf %72, %76 : vector<2x32xf32>
    %cst_32 = arith.constant dense<0.000000e+00> : vector<2x8xf32>
    %78 = tpu.matmul %77, %8, %cst_32 {dimension_numbers = #tpu.dot_dimension_numbers<[1], [0], [0], [1], [0, 0, 1, 1], [], []>} : vector<2x32xf32>, vector<32x8xf32>, vector<2x8xf32> -> vector<2x8xf32>
    %79 = arith.addf %78, %11 : vector<2x8xf32>
    %80 = arith.negf %79 : vector<2x8xf32>
    %81 = math.exp %80 : vector<2x8xf32>
    %cst_33 = arith.constant 1.000000e+00 : f32
    %82 = vector.broadcast %cst_33 : f32 to vector<2x8xf32>
    %83 = arith.addf %82, %81 : vector<2x8xf32>
    %84 = arith.divf %82, %83 : vector<2x8xf32>
    %c0_34 = arith.constant 0 : index
    %c1_35 = arith.constant 1 : index
    %c0_36 = arith.constant 0 : index
    %85 = vector.load %arg0[%c0_34, %c1_35, %c0_36] : memref<2x8x16xf32, #tpu.memory_space<vmem>>, vector<2x1x16xf32>
    %86 = vector.shape_cast %85 : vector<2x1x16xf32> to vector<2x16xf32>
    %87 = tpu.concatenate %86, %49 in 1 : vector<2x16xf32>, vector<2x32xf32> -> vector<2x48xf32>
    %cst_37 = arith.constant dense<0.000000e+00> : vector<2x128xf32>
    %88 = tpu.matmul %87, %0, %cst_37 {dimension_numbers = #tpu.dot_dimension_numbers<[1], [0], [0], [1], [0, 0, 1, 1], [], []>} : vector<2x48xf32>, vector<48x128xf32>, vector<2x128xf32> -> vector<2x128xf32>
    %89 = arith.addf %88, %3 : vector<2x128xf32>
    %90 = vector.extract_strided_slice %89 {offsets = [0, 0], sizes = [2, 32], strides = [1, 1]} : vector<2x128xf32> to vector<2x32xf32>
    %91 = arith.negf %90 : vector<2x32xf32>
    %92 = math.exp %91 : vector<2x32xf32>
    %cst_38 = arith.constant 1.000000e+00 : f32
    %93 = vector.broadcast %cst_38 : f32 to vector<2x32xf32>
    %94 = arith.addf %93, %92 : vector<2x32xf32>
    %95 = arith.divf %93, %94 : vector<2x32xf32>
    %96 = vector.extract_strided_slice %89 {offsets = [0, 32], sizes = [2, 32], strides = [1, 1]} : vector<2x128xf32> to vector<2x32xf32>
    %97 = arith.negf %96 : vector<2x32xf32>
    %98 = math.exp %97 : vector<2x32xf32>
    %cst_39 = arith.constant 1.000000e+00 : f32
    %99 = vector.broadcast %cst_39 : f32 to vector<2x32xf32>
    %100 = arith.addf %99, %98 : vector<2x32xf32>
    %101 = arith.divf %99, %100 : vector<2x32xf32>
    %102 = vector.extract_strided_slice %89 {offsets = [0, 64], sizes = [2, 32], strides = [1, 1]} : vector<2x128xf32> to vector<2x32xf32>
    %103 = math.tanh %102 : vector<2x32xf32>
    %104 = vector.extract_strided_slice %89 {offsets = [0, 96], sizes = [2, 32], strides = [1, 1]} : vector<2x128xf32> to vector<2x32xf32>
    %105 = arith.negf %104 : vector<2x32xf32>
    %106 = math.exp %105 : vector<2x32xf32>
    %cst_40 = arith.constant 1.000000e+00 : f32
    %107 = vector.broadcast %cst_40 : f32 to vector<2x32xf32>
    %108 = arith.addf %107, %106 : vector<2x32xf32>
    %109 = arith.divf %107, %108 : vector<2x32xf32>
    %110 = arith.mulf %101, %47 : vector<2x32xf32>
    %111 = arith.mulf %95, %103 : vector<2x32xf32>
    %112 = arith.addf %110, %111 : vector<2x32xf32>
    %113 = math.tanh %112 : vector<2x32xf32>
    %114 = arith.mulf %109, %113 : vector<2x32xf32>
    %115 = tpu.concatenate %114, %77 in 1 : vector<2x32xf32>, vector<2x32xf32> -> vector<2x64xf32>
    %cst_41 = arith.constant dense<0.000000e+00> : vector<2x128xf32>
    %116 = tpu.matmul %115, %4, %cst_41 {dimension_numbers = #tpu.dot_dimension_numbers<[1], [0], [0], [1], [0, 0, 1, 1], [], []>} : vector<2x64xf32>, vector<64x128xf32>, vector<2x128xf32> -> vector<2x128xf32>
    %117 = arith.addf %116, %7 : vector<2x128xf32>
    %118 = vector.extract_strided_slice %117 {offsets = [0, 0], sizes = [2, 32], strides = [1, 1]} : vector<2x128xf32> to vector<2x32xf32>
    %119 = arith.negf %118 : vector<2x32xf32>
    %120 = math.exp %119 : vector<2x32xf32>
    %cst_42 = arith.constant 1.000000e+00 : f32
    %121 = vector.broadcast %cst_42 : f32 to vector<2x32xf32>
    %122 = arith.addf %121, %120 : vector<2x32xf32>
    %123 = arith.divf %121, %122 : vector<2x32xf32>
    %124 = vector.extract_strided_slice %117 {offsets = [0, 32], sizes = [2, 32], strides = [1, 1]} : vector<2x128xf32> to vector<2x32xf32>
    %125 = arith.negf %124 : vector<2x32xf32>
    %126 = math.exp %125 : vector<2x32xf32>
    %cst_43 = arith.constant 1.000000e+00 : f32
    %127 = vector.broadcast %cst_43 : f32 to vector<2x32xf32>
    %128 = arith.addf %127, %126 : vector<2x32xf32>
    %129 = arith.divf %127, %128 : vector<2x32xf32>
    %130 = vector.extract_strided_slice %117 {offsets = [0, 64], sizes = [2, 32], strides = [1, 1]} : vector<2x128xf32> to vector<2x32xf32>
    %131 = math.tanh %130 : vector<2x32xf32>
    %132 = vector.extract_strided_slice %117 {offsets = [0, 96], sizes = [2, 32], strides = [1, 1]} : vector<2x128xf32> to vector<2x32xf32>
    %133 = arith.negf %132 : vector<2x32xf32>
    %134 = math.exp %133 : vector<2x32xf32>
    %cst_44 = arith.constant 1.000000e+00 : f32
    %135 = vector.broadcast %cst_44 : f32 to vector<2x32xf32>
    %136 = arith.addf %135, %134 : vector<2x32xf32>
    %137 = arith.divf %135, %136 : vector<2x32xf32>
    %138 = arith.mulf %129, %75 : vector<2x32xf32>
    %139 = arith.mulf %123, %131 : vector<2x32xf32>
    %140 = arith.addf %138, %139 : vector<2x32xf32>
    %141 = math.tanh %140 : vector<2x32xf32>
    %142 = arith.mulf %137, %141 : vector<2x32xf32>
    %cst_45 = arith.constant dense<0.000000e+00> : vector<2x8xf32>
    %143 = tpu.matmul %142, %8, %cst_45 {dimension_numbers = #tpu.dot_dimension_numbers<[1], [0], [0], [1], [0, 0, 1, 1], [], []>} : vector<2x32xf32>, vector<32x8xf32>, vector<2x8xf32> -> vector<2x8xf32>
    %144 = arith.addf %143, %11 : vector<2x8xf32>
    %145 = arith.negf %144 : vector<2x8xf32>
    %146 = math.exp %145 : vector<2x8xf32>
    %cst_46 = arith.constant 1.000000e+00 : f32
    %147 = vector.broadcast %cst_46 : f32 to vector<2x8xf32>
    %148 = arith.addf %147, %146 : vector<2x8xf32>
    %149 = arith.divf %147, %148 : vector<2x8xf32>
    %c0_47 = arith.constant 0 : index
    %c2 = arith.constant 2 : index
    %c0_48 = arith.constant 0 : index
    %150 = vector.load %arg0[%c0_47, %c2, %c0_48] : memref<2x8x16xf32, #tpu.memory_space<vmem>>, vector<2x1x16xf32>
    %151 = vector.shape_cast %150 : vector<2x1x16xf32> to vector<2x16xf32>
    %152 = tpu.concatenate %151, %114 in 1 : vector<2x16xf32>, vector<2x32xf32> -> vector<2x48xf32>
    %cst_49 = arith.constant dense<0.000000e+00> : vector<2x128xf32>
    %153 = tpu.matmul %152, %0, %cst_49 {dimension_numbers = #tpu.dot_dimension_numbers<[1], [0], [0], [1], [0, 0, 1, 1], [], []>} : vector<2x48xf32>, vector<48x128xf32>, vector<2x128xf32> -> vector<2x128xf32>
    %154 = arith.addf %153, %3 : vector<2x128xf32>
    %155 = vector.extract_strided_slice %154 {offsets = [0, 0], sizes = [2, 32], strides = [1, 1]} : vector<2x128xf32> to vector<2x32xf32>
    %156 = arith.negf %155 : vector<2x32xf32>
    %157 = math.exp %156 : vector<2x32xf32>
    %cst_50 = arith.constant 1.000000e+00 : f32
    %158 = vector.broadcast %cst_50 : f32 to vector<2x32xf32>
    %159 = arith.addf %158, %157 : vector<2x32xf32>
    %160 = arith.divf %158, %159 : vector<2x32xf32>
    %161 = vector.extract_strided_slice %154 {offsets = [0, 32], sizes = [2, 32], strides = [1, 1]} : vector<2x128xf32> to vector<2x32xf32>
    %162 = arith.negf %161 : vector<2x32xf32>
    %163 = math.exp %162 : vector<2x32xf32>
    %cst_51 = arith.constant 1.000000e+00 : f32
    %164 = vector.broadcast %cst_51 : f32 to vector<2x32xf32>
    %165 = arith.addf %164, %163 : vector<2x32xf32>
    %166 = arith.divf %164, %165 : vector<2x32xf32>
    %167 = vector.extract_strided_slice %154 {offsets = [0, 64], sizes = [2, 32], strides = [1, 1]} : vector<2x128xf32> to vector<2x32xf32>
    %168 = math.tanh %167 : vector<2x32xf32>
    %169 = vector.extract_strided_slice %154 {offsets = [0, 96], sizes = [2, 32], strides = [1, 1]} : vector<2x128xf32> to vector<2x32xf32>
    %170 = arith.negf %169 : vector<2x32xf32>
    %171 = math.exp %170 : vector<2x32xf32>
    %cst_52 = arith.constant 1.000000e+00 : f32
    %172 = vector.broadcast %cst_52 : f32 to vector<2x32xf32>
    %173 = arith.addf %172, %171 : vector<2x32xf32>
    %174 = arith.divf %172, %173 : vector<2x32xf32>
    %175 = arith.mulf %166, %112 : vector<2x32xf32>
    %176 = arith.mulf %160, %168 : vector<2x32xf32>
    %177 = arith.addf %175, %176 : vector<2x32xf32>
    %178 = math.tanh %177 : vector<2x32xf32>
    %179 = arith.mulf %174, %178 : vector<2x32xf32>
    %180 = tpu.concatenate %179, %142 in 1 : vector<2x32xf32>, vector<2x32xf32> -> vector<2x64xf32>
    %cst_53 = arith.constant dense<0.000000e+00> : vector<2x128xf32>
    %181 = tpu.matmul %180, %4, %cst_53 {dimension_numbers = #tpu.dot_dimension_numbers<[1], [0], [0], [1], [0, 0, 1, 1], [], []>} : vector<2x64xf32>, vector<64x128xf32>, vector<2x128xf32> -> vector<2x128xf32>
    %182 = arith.addf %181, %7 : vector<2x128xf32>
    %183 = vector.extract_strided_slice %182 {offsets = [0, 0], sizes = [2, 32], strides = [1, 1]} : vector<2x128xf32> to vector<2x32xf32>
    %184 = arith.negf %183 : vector<2x32xf32>
    %185 = math.exp %184 : vector<2x32xf32>
    %cst_54 = arith.constant 1.000000e+00 : f32
    %186 = vector.broadcast %cst_54 : f32 to vector<2x32xf32>
    %187 = arith.addf %186, %185 : vector<2x32xf32>
    %188 = arith.divf %186, %187 : vector<2x32xf32>
    %189 = vector.extract_strided_slice %182 {offsets = [0, 32], sizes = [2, 32], strides = [1, 1]} : vector<2x128xf32> to vector<2x32xf32>
    %190 = arith.negf %189 : vector<2x32xf32>
    %191 = math.exp %190 : vector<2x32xf32>
    %cst_55 = arith.constant 1.000000e+00 : f32
    %192 = vector.broadcast %cst_55 : f32 to vector<2x32xf32>
    %193 = arith.addf %192, %191 : vector<2x32xf32>
    %194 = arith.divf %192, %193 : vector<2x32xf32>
    %195 = vector.extract_strided_slice %182 {offsets = [0, 64], sizes = [2, 32], strides = [1, 1]} : vector<2x128xf32> to vector<2x32xf32>
    %196 = math.tanh %195 : vector<2x32xf32>
    %197 = vector.extract_strided_slice %182 {offsets = [0, 96], sizes = [2, 32], strides = [1, 1]} : vector<2x128xf32> to vector<2x32xf32>
    %198 = arith.negf %197 : vector<2x32xf32>
    %199 = math.exp %198 : vector<2x32xf32>
    %cst_56 = arith.constant 1.000000e+00 : f32
    %200 = vector.broadcast %cst_56 : f32 to vector<2x32xf32>
    %201 = arith.addf %200, %199 : vector<2x32xf32>
    %202 = arith.divf %200, %201 : vector<2x32xf32>
    %203 = arith.mulf %194, %140 : vector<2x32xf32>
    %204 = arith.mulf %188, %196 : vector<2x32xf32>
    %205 = arith.addf %203, %204 : vector<2x32xf32>
    %206 = math.tanh %205 : vector<2x32xf32>
    %207 = arith.mulf %202, %206 : vector<2x32xf32>
    %cst_57 = arith.constant dense<0.000000e+00> : vector<2x8xf32>
    %208 = tpu.matmul %207, %8, %cst_57 {dimension_numbers = #tpu.dot_dimension_numbers<[1], [0], [0], [1], [0, 0, 1, 1], [], []>} : vector<2x32xf32>, vector<32x8xf32>, vector<2x8xf32> -> vector<2x8xf32>
    %209 = arith.addf %208, %11 : vector<2x8xf32>
    %210 = arith.negf %209 : vector<2x8xf32>
    %211 = math.exp %210 : vector<2x8xf32>
    %cst_58 = arith.constant 1.000000e+00 : f32
    %212 = vector.broadcast %cst_58 : f32 to vector<2x8xf32>
    %213 = arith.addf %212, %211 : vector<2x8xf32>
    %214 = arith.divf %212, %213 : vector<2x8xf32>
    %c0_59 = arith.constant 0 : index
    %c3 = arith.constant 3 : index
    %c0_60 = arith.constant 0 : index
    %215 = vector.load %arg0[%c0_59, %c3, %c0_60] : memref<2x8x16xf32, #tpu.memory_space<vmem>>, vector<2x1x16xf32>
    %216 = vector.shape_cast %215 : vector<2x1x16xf32> to vector<2x16xf32>
    %217 = tpu.concatenate %216, %179 in 1 : vector<2x16xf32>, vector<2x32xf32> -> vector<2x48xf32>
    %cst_61 = arith.constant dense<0.000000e+00> : vector<2x128xf32>
    %218 = tpu.matmul %217, %0, %cst_61 {dimension_numbers = #tpu.dot_dimension_numbers<[1], [0], [0], [1], [0, 0, 1, 1], [], []>} : vector<2x48xf32>, vector<48x128xf32>, vector<2x128xf32> -> vector<2x128xf32>
    %219 = arith.addf %218, %3 : vector<2x128xf32>
    %220 = vector.extract_strided_slice %219 {offsets = [0, 0], sizes = [2, 32], strides = [1, 1]} : vector<2x128xf32> to vector<2x32xf32>
    %221 = arith.negf %220 : vector<2x32xf32>
    %222 = math.exp %221 : vector<2x32xf32>
    %cst_62 = arith.constant 1.000000e+00 : f32
    %223 = vector.broadcast %cst_62 : f32 to vector<2x32xf32>
    %224 = arith.addf %223, %222 : vector<2x32xf32>
    %225 = arith.divf %223, %224 : vector<2x32xf32>
    %226 = vector.extract_strided_slice %219 {offsets = [0, 32], sizes = [2, 32], strides = [1, 1]} : vector<2x128xf32> to vector<2x32xf32>
    %227 = arith.negf %226 : vector<2x32xf32>
    %228 = math.exp %227 : vector<2x32xf32>
    %cst_63 = arith.constant 1.000000e+00 : f32
    %229 = vector.broadcast %cst_63 : f32 to vector<2x32xf32>
    %230 = arith.addf %229, %228 : vector<2x32xf32>
    %231 = arith.divf %229, %230 : vector<2x32xf32>
    %232 = vector.extract_strided_slice %219 {offsets = [0, 64], sizes = [2, 32], strides = [1, 1]} : vector<2x128xf32> to vector<2x32xf32>
    %233 = math.tanh %232 : vector<2x32xf32>
    %234 = vector.extract_strided_slice %219 {offsets = [0, 96], sizes = [2, 32], strides = [1, 1]} : vector<2x128xf32> to vector<2x32xf32>
    %235 = arith.negf %234 : vector<2x32xf32>
    %236 = math.exp %235 : vector<2x32xf32>
    %cst_64 = arith.constant 1.000000e+00 : f32
    %237 = vector.broadcast %cst_64 : f32 to vector<2x32xf32>
    %238 = arith.addf %237, %236 : vector<2x32xf32>
    %239 = arith.divf %237, %238 : vector<2x32xf32>
    %240 = arith.mulf %231, %177 : vector<2x32xf32>
    %241 = arith.mulf %225, %233 : vector<2x32xf32>
    %242 = arith.addf %240, %241 : vector<2x32xf32>
    %243 = math.tanh %242 : vector<2x32xf32>
    %244 = arith.mulf %239, %243 : vector<2x32xf32>
    %245 = tpu.concatenate %244, %207 in 1 : vector<2x32xf32>, vector<2x32xf32> -> vector<2x64xf32>
    %cst_65 = arith.constant dense<0.000000e+00> : vector<2x128xf32>
    %246 = tpu.matmul %245, %4, %cst_65 {dimension_numbers = #tpu.dot_dimension_numbers<[1], [0], [0], [1], [0, 0, 1, 1], [], []>} : vector<2x64xf32>, vector<64x128xf32>, vector<2x128xf32> -> vector<2x128xf32>
    %247 = arith.addf %246, %7 : vector<2x128xf32>
    %248 = vector.extract_strided_slice %247 {offsets = [0, 0], sizes = [2, 32], strides = [1, 1]} : vector<2x128xf32> to vector<2x32xf32>
    %249 = arith.negf %248 : vector<2x32xf32>
    %250 = math.exp %249 : vector<2x32xf32>
    %cst_66 = arith.constant 1.000000e+00 : f32
    %251 = vector.broadcast %cst_66 : f32 to vector<2x32xf32>
    %252 = arith.addf %251, %250 : vector<2x32xf32>
    %253 = arith.divf %251, %252 : vector<2x32xf32>
    %254 = vector.extract_strided_slice %247 {offsets = [0, 32], sizes = [2, 32], strides = [1, 1]} : vector<2x128xf32> to vector<2x32xf32>
    %255 = arith.negf %254 : vector<2x32xf32>
    %256 = math.exp %255 : vector<2x32xf32>
    %cst_67 = arith.constant 1.000000e+00 : f32
    %257 = vector.broadcast %cst_67 : f32 to vector<2x32xf32>
    %258 = arith.addf %257, %256 : vector<2x32xf32>
    %259 = arith.divf %257, %258 : vector<2x32xf32>
    %260 = vector.extract_strided_slice %247 {offsets = [0, 64], sizes = [2, 32], strides = [1, 1]} : vector<2x128xf32> to vector<2x32xf32>
    %261 = math.tanh %260 : vector<2x32xf32>
    %262 = vector.extract_strided_slice %247 {offsets = [0, 96], sizes = [2, 32], strides = [1, 1]} : vector<2x128xf32> to vector<2x32xf32>
    %263 = arith.negf %262 : vector<2x32xf32>
    %264 = math.exp %263 : vector<2x32xf32>
    %cst_68 = arith.constant 1.000000e+00 : f32
    %265 = vector.broadcast %cst_68 : f32 to vector<2x32xf32>
    %266 = arith.addf %265, %264 : vector<2x32xf32>
    %267 = arith.divf %265, %266 : vector<2x32xf32>
    %268 = arith.mulf %259, %205 : vector<2x32xf32>
    %269 = arith.mulf %253, %261 : vector<2x32xf32>
    %270 = arith.addf %268, %269 : vector<2x32xf32>
    %271 = math.tanh %270 : vector<2x32xf32>
    %272 = arith.mulf %267, %271 : vector<2x32xf32>
    %cst_69 = arith.constant dense<0.000000e+00> : vector<2x8xf32>
    %273 = tpu.matmul %272, %8, %cst_69 {dimension_numbers = #tpu.dot_dimension_numbers<[1], [0], [0], [1], [0, 0, 1, 1], [], []>} : vector<2x32xf32>, vector<32x8xf32>, vector<2x8xf32> -> vector<2x8xf32>
    %274 = arith.addf %273, %11 : vector<2x8xf32>
    %275 = arith.negf %274 : vector<2x8xf32>
    %276 = math.exp %275 : vector<2x8xf32>
    %cst_70 = arith.constant 1.000000e+00 : f32
    %277 = vector.broadcast %cst_70 : f32 to vector<2x8xf32>
    %278 = arith.addf %277, %276 : vector<2x8xf32>
    %279 = arith.divf %277, %278 : vector<2x8xf32>
    %c0_71 = arith.constant 0 : index
    %c4 = arith.constant 4 : index
    %c0_72 = arith.constant 0 : index
    %280 = vector.load %arg0[%c0_71, %c4, %c0_72] : memref<2x8x16xf32, #tpu.memory_space<vmem>>, vector<2x1x16xf32>
    %281 = vector.shape_cast %280 : vector<2x1x16xf32> to vector<2x16xf32>
    %282 = tpu.concatenate %281, %244 in 1 : vector<2x16xf32>, vector<2x32xf32> -> vector<2x48xf32>
    %cst_73 = arith.constant dense<0.000000e+00> : vector<2x128xf32>
    %283 = tpu.matmul %282, %0, %cst_73 {dimension_numbers = #tpu.dot_dimension_numbers<[1], [0], [0], [1], [0, 0, 1, 1], [], []>} : vector<2x48xf32>, vector<48x128xf32>, vector<2x128xf32> -> vector<2x128xf32>
    %284 = arith.addf %283, %3 : vector<2x128xf32>
    %285 = vector.extract_strided_slice %284 {offsets = [0, 0], sizes = [2, 32], strides = [1, 1]} : vector<2x128xf32> to vector<2x32xf32>
    %286 = arith.negf %285 : vector<2x32xf32>
    %287 = math.exp %286 : vector<2x32xf32>
    %cst_74 = arith.constant 1.000000e+00 : f32
    %288 = vector.broadcast %cst_74 : f32 to vector<2x32xf32>
    %289 = arith.addf %288, %287 : vector<2x32xf32>
    %290 = arith.divf %288, %289 : vector<2x32xf32>
    %291 = vector.extract_strided_slice %284 {offsets = [0, 32], sizes = [2, 32], strides = [1, 1]} : vector<2x128xf32> to vector<2x32xf32>
    %292 = arith.negf %291 : vector<2x32xf32>
    %293 = math.exp %292 : vector<2x32xf32>
    %cst_75 = arith.constant 1.000000e+00 : f32
    %294 = vector.broadcast %cst_75 : f32 to vector<2x32xf32>
    %295 = arith.addf %294, %293 : vector<2x32xf32>
    %296 = arith.divf %294, %295 : vector<2x32xf32>
    %297 = vector.extract_strided_slice %284 {offsets = [0, 64], sizes = [2, 32], strides = [1, 1]} : vector<2x128xf32> to vector<2x32xf32>
    %298 = math.tanh %297 : vector<2x32xf32>
    %299 = vector.extract_strided_slice %284 {offsets = [0, 96], sizes = [2, 32], strides = [1, 1]} : vector<2x128xf32> to vector<2x32xf32>
    %300 = arith.negf %299 : vector<2x32xf32>
    %301 = math.exp %300 : vector<2x32xf32>
    %cst_76 = arith.constant 1.000000e+00 : f32
    %302 = vector.broadcast %cst_76 : f32 to vector<2x32xf32>
    %303 = arith.addf %302, %301 : vector<2x32xf32>
    %304 = arith.divf %302, %303 : vector<2x32xf32>
    %305 = arith.mulf %296, %242 : vector<2x32xf32>
    %306 = arith.mulf %290, %298 : vector<2x32xf32>
    %307 = arith.addf %305, %306 : vector<2x32xf32>
    %308 = math.tanh %307 : vector<2x32xf32>
    %309 = arith.mulf %304, %308 : vector<2x32xf32>
    %310 = tpu.concatenate %309, %272 in 1 : vector<2x32xf32>, vector<2x32xf32> -> vector<2x64xf32>
    %cst_77 = arith.constant dense<0.000000e+00> : vector<2x128xf32>
    %311 = tpu.matmul %310, %4, %cst_77 {dimension_numbers = #tpu.dot_dimension_numbers<[1], [0], [0], [1], [0, 0, 1, 1], [], []>} : vector<2x64xf32>, vector<64x128xf32>, vector<2x128xf32> -> vector<2x128xf32>
    %312 = arith.addf %311, %7 : vector<2x128xf32>
    %313 = vector.extract_strided_slice %312 {offsets = [0, 0], sizes = [2, 32], strides = [1, 1]} : vector<2x128xf32> to vector<2x32xf32>
    %314 = arith.negf %313 : vector<2x32xf32>
    %315 = math.exp %314 : vector<2x32xf32>
    %cst_78 = arith.constant 1.000000e+00 : f32
    %316 = vector.broadcast %cst_78 : f32 to vector<2x32xf32>
    %317 = arith.addf %316, %315 : vector<2x32xf32>
    %318 = arith.divf %316, %317 : vector<2x32xf32>
    %319 = vector.extract_strided_slice %312 {offsets = [0, 32], sizes = [2, 32], strides = [1, 1]} : vector<2x128xf32> to vector<2x32xf32>
    %320 = arith.negf %319 : vector<2x32xf32>
    %321 = math.exp %320 : vector<2x32xf32>
    %cst_79 = arith.constant 1.000000e+00 : f32
    %322 = vector.broadcast %cst_79 : f32 to vector<2x32xf32>
    %323 = arith.addf %322, %321 : vector<2x32xf32>
    %324 = arith.divf %322, %323 : vector<2x32xf32>
    %325 = vector.extract_strided_slice %312 {offsets = [0, 64], sizes = [2, 32], strides = [1, 1]} : vector<2x128xf32> to vector<2x32xf32>
    %326 = math.tanh %325 : vector<2x32xf32>
    %327 = vector.extract_strided_slice %312 {offsets = [0, 96], sizes = [2, 32], strides = [1, 1]} : vector<2x128xf32> to vector<2x32xf32>
    %328 = arith.negf %327 : vector<2x32xf32>
    %329 = math.exp %328 : vector<2x32xf32>
    %cst_80 = arith.constant 1.000000e+00 : f32
    %330 = vector.broadcast %cst_80 : f32 to vector<2x32xf32>
    %331 = arith.addf %330, %329 : vector<2x32xf32>
    %332 = arith.divf %330, %331 : vector<2x32xf32>
    %333 = arith.mulf %324, %270 : vector<2x32xf32>
    %334 = arith.mulf %318, %326 : vector<2x32xf32>
    %335 = arith.addf %333, %334 : vector<2x32xf32>
    %336 = math.tanh %335 : vector<2x32xf32>
    %337 = arith.mulf %332, %336 : vector<2x32xf32>
    %cst_81 = arith.constant dense<0.000000e+00> : vector<2x8xf32>
    %338 = tpu.matmul %337, %8, %cst_81 {dimension_numbers = #tpu.dot_dimension_numbers<[1], [0], [0], [1], [0, 0, 1, 1], [], []>} : vector<2x32xf32>, vector<32x8xf32>, vector<2x8xf32> -> vector<2x8xf32>
    %339 = arith.addf %338, %11 : vector<2x8xf32>
    %340 = arith.negf %339 : vector<2x8xf32>
    %341 = math.exp %340 : vector<2x8xf32>
    %cst_82 = arith.constant 1.000000e+00 : f32
    %342 = vector.broadcast %cst_82 : f32 to vector<2x8xf32>
    %343 = arith.addf %342, %341 : vector<2x8xf32>
    %344 = arith.divf %342, %343 : vector<2x8xf32>
    %c0_83 = arith.constant 0 : index
    %c5 = arith.constant 5 : index
    %c0_84 = arith.constant 0 : index
    %345 = vector.load %arg0[%c0_83, %c5, %c0_84] : memref<2x8x16xf32, #tpu.memory_space<vmem>>, vector<2x1x16xf32>
    %346 = vector.shape_cast %345 : vector<2x1x16xf32> to vector<2x16xf32>
    %347 = tpu.concatenate %346, %309 in 1 : vector<2x16xf32>, vector<2x32xf32> -> vector<2x48xf32>
    %cst_85 = arith.constant dense<0.000000e+00> : vector<2x128xf32>
    %348 = tpu.matmul %347, %0, %cst_85 {dimension_numbers = #tpu.dot_dimension_numbers<[1], [0], [0], [1], [0, 0, 1, 1], [], []>} : vector<2x48xf32>, vector<48x128xf32>, vector<2x128xf32> -> vector<2x128xf32>
    %349 = arith.addf %348, %3 : vector<2x128xf32>
    %350 = vector.extract_strided_slice %349 {offsets = [0, 0], sizes = [2, 32], strides = [1, 1]} : vector<2x128xf32> to vector<2x32xf32>
    %351 = arith.negf %350 : vector<2x32xf32>
    %352 = math.exp %351 : vector<2x32xf32>
    %cst_86 = arith.constant 1.000000e+00 : f32
    %353 = vector.broadcast %cst_86 : f32 to vector<2x32xf32>
    %354 = arith.addf %353, %352 : vector<2x32xf32>
    %355 = arith.divf %353, %354 : vector<2x32xf32>
    %356 = vector.extract_strided_slice %349 {offsets = [0, 32], sizes = [2, 32], strides = [1, 1]} : vector<2x128xf32> to vector<2x32xf32>
    %357 = arith.negf %356 : vector<2x32xf32>
    %358 = math.exp %357 : vector<2x32xf32>
    %cst_87 = arith.constant 1.000000e+00 : f32
    %359 = vector.broadcast %cst_87 : f32 to vector<2x32xf32>
    %360 = arith.addf %359, %358 : vector<2x32xf32>
    %361 = arith.divf %359, %360 : vector<2x32xf32>
    %362 = vector.extract_strided_slice %349 {offsets = [0, 64], sizes = [2, 32], strides = [1, 1]} : vector<2x128xf32> to vector<2x32xf32>
    %363 = math.tanh %362 : vector<2x32xf32>
    %364 = vector.extract_strided_slice %349 {offsets = [0, 96], sizes = [2, 32], strides = [1, 1]} : vector<2x128xf32> to vector<2x32xf32>
    %365 = arith.negf %364 : vector<2x32xf32>
    %366 = math.exp %365 : vector<2x32xf32>
    %cst_88 = arith.constant 1.000000e+00 : f32
    %367 = vector.broadcast %cst_88 : f32 to vector<2x32xf32>
    %368 = arith.addf %367, %366 : vector<2x32xf32>
    %369 = arith.divf %367, %368 : vector<2x32xf32>
    %370 = arith.mulf %361, %307 : vector<2x32xf32>
    %371 = arith.mulf %355, %363 : vector<2x32xf32>
    %372 = arith.addf %370, %371 : vector<2x32xf32>
    %373 = math.tanh %372 : vector<2x32xf32>
    %374 = arith.mulf %369, %373 : vector<2x32xf32>
    %375 = tpu.concatenate %374, %337 in 1 : vector<2x32xf32>, vector<2x32xf32> -> vector<2x64xf32>
    %cst_89 = arith.constant dense<0.000000e+00> : vector<2x128xf32>
    %376 = tpu.matmul %375, %4, %cst_89 {dimension_numbers = #tpu.dot_dimension_numbers<[1], [0], [0], [1], [0, 0, 1, 1], [], []>} : vector<2x64xf32>, vector<64x128xf32>, vector<2x128xf32> -> vector<2x128xf32>
    %377 = arith.addf %376, %7 : vector<2x128xf32>
    %378 = vector.extract_strided_slice %377 {offsets = [0, 0], sizes = [2, 32], strides = [1, 1]} : vector<2x128xf32> to vector<2x32xf32>
    %379 = arith.negf %378 : vector<2x32xf32>
    %380 = math.exp %379 : vector<2x32xf32>
    %cst_90 = arith.constant 1.000000e+00 : f32
    %381 = vector.broadcast %cst_90 : f32 to vector<2x32xf32>
    %382 = arith.addf %381, %380 : vector<2x32xf32>
    %383 = arith.divf %381, %382 : vector<2x32xf32>
    %384 = vector.extract_strided_slice %377 {offsets = [0, 32], sizes = [2, 32], strides = [1, 1]} : vector<2x128xf32> to vector<2x32xf32>
    %385 = arith.negf %384 : vector<2x32xf32>
    %386 = math.exp %385 : vector<2x32xf32>
    %cst_91 = arith.constant 1.000000e+00 : f32
    %387 = vector.broadcast %cst_91 : f32 to vector<2x32xf32>
    %388 = arith.addf %387, %386 : vector<2x32xf32>
    %389 = arith.divf %387, %388 : vector<2x32xf32>
    %390 = vector.extract_strided_slice %377 {offsets = [0, 64], sizes = [2, 32], strides = [1, 1]} : vector<2x128xf32> to vector<2x32xf32>
    %391 = math.tanh %390 : vector<2x32xf32>
    %392 = vector.extract_strided_slice %377 {offsets = [0, 96], sizes = [2, 32], strides = [1, 1]} : vector<2x128xf32> to vector<2x32xf32>
    %393 = arith.negf %392 : vector<2x32xf32>
    %394 = math.exp %393 : vector<2x32xf32>
    %cst_92 = arith.constant 1.000000e+00 : f32
    %395 = vector.broadcast %cst_92 : f32 to vector<2x32xf32>
    %396 = arith.addf %395, %394 : vector<2x32xf32>
    %397 = arith.divf %395, %396 : vector<2x32xf32>
    %398 = arith.mulf %389, %335 : vector<2x32xf32>
    %399 = arith.mulf %383, %391 : vector<2x32xf32>
    %400 = arith.addf %398, %399 : vector<2x32xf32>
    %401 = math.tanh %400 : vector<2x32xf32>
    %402 = arith.mulf %397, %401 : vector<2x32xf32>
    %cst_93 = arith.constant dense<0.000000e+00> : vector<2x8xf32>
    %403 = tpu.matmul %402, %8, %cst_93 {dimension_numbers = #tpu.dot_dimension_numbers<[1], [0], [0], [1], [0, 0, 1, 1], [], []>} : vector<2x32xf32>, vector<32x8xf32>, vector<2x8xf32> -> vector<2x8xf32>
    %404 = arith.addf %403, %11 : vector<2x8xf32>
    %405 = arith.negf %404 : vector<2x8xf32>
    %406 = math.exp %405 : vector<2x8xf32>
    %cst_94 = arith.constant 1.000000e+00 : f32
    %407 = vector.broadcast %cst_94 : f32 to vector<2x8xf32>
    %408 = arith.addf %407, %406 : vector<2x8xf32>
    %409 = arith.divf %407, %408 : vector<2x8xf32>
    %c0_95 = arith.constant 0 : index
    %c6 = arith.constant 6 : index
    %c0_96 = arith.constant 0 : index
    %410 = vector.load %arg0[%c0_95, %c6, %c0_96] : memref<2x8x16xf32, #tpu.memory_space<vmem>>, vector<2x1x16xf32>
    %411 = vector.shape_cast %410 : vector<2x1x16xf32> to vector<2x16xf32>
    %412 = tpu.concatenate %411, %374 in 1 : vector<2x16xf32>, vector<2x32xf32> -> vector<2x48xf32>
    %cst_97 = arith.constant dense<0.000000e+00> : vector<2x128xf32>
    %413 = tpu.matmul %412, %0, %cst_97 {dimension_numbers = #tpu.dot_dimension_numbers<[1], [0], [0], [1], [0, 0, 1, 1], [], []>} : vector<2x48xf32>, vector<48x128xf32>, vector<2x128xf32> -> vector<2x128xf32>
    %414 = arith.addf %413, %3 : vector<2x128xf32>
    %415 = vector.extract_strided_slice %414 {offsets = [0, 0], sizes = [2, 32], strides = [1, 1]} : vector<2x128xf32> to vector<2x32xf32>
    %416 = arith.negf %415 : vector<2x32xf32>
    %417 = math.exp %416 : vector<2x32xf32>
    %cst_98 = arith.constant 1.000000e+00 : f32
    %418 = vector.broadcast %cst_98 : f32 to vector<2x32xf32>
    %419 = arith.addf %418, %417 : vector<2x32xf32>
    %420 = arith.divf %418, %419 : vector<2x32xf32>
    %421 = vector.extract_strided_slice %414 {offsets = [0, 32], sizes = [2, 32], strides = [1, 1]} : vector<2x128xf32> to vector<2x32xf32>
    %422 = arith.negf %421 : vector<2x32xf32>
    %423 = math.exp %422 : vector<2x32xf32>
    %cst_99 = arith.constant 1.000000e+00 : f32
    %424 = vector.broadcast %cst_99 : f32 to vector<2x32xf32>
    %425 = arith.addf %424, %423 : vector<2x32xf32>
    %426 = arith.divf %424, %425 : vector<2x32xf32>
    %427 = vector.extract_strided_slice %414 {offsets = [0, 64], sizes = [2, 32], strides = [1, 1]} : vector<2x128xf32> to vector<2x32xf32>
    %428 = math.tanh %427 : vector<2x32xf32>
    %429 = vector.extract_strided_slice %414 {offsets = [0, 96], sizes = [2, 32], strides = [1, 1]} : vector<2x128xf32> to vector<2x32xf32>
    %430 = arith.negf %429 : vector<2x32xf32>
    %431 = math.exp %430 : vector<2x32xf32>
    %cst_100 = arith.constant 1.000000e+00 : f32
    %432 = vector.broadcast %cst_100 : f32 to vector<2x32xf32>
    %433 = arith.addf %432, %431 : vector<2x32xf32>
    %434 = arith.divf %432, %433 : vector<2x32xf32>
    %435 = arith.mulf %426, %372 : vector<2x32xf32>
    %436 = arith.mulf %420, %428 : vector<2x32xf32>
    %437 = arith.addf %435, %436 : vector<2x32xf32>
    %438 = math.tanh %437 : vector<2x32xf32>
    %439 = arith.mulf %434, %438 : vector<2x32xf32>
    %440 = tpu.concatenate %439, %402 in 1 : vector<2x32xf32>, vector<2x32xf32> -> vector<2x64xf32>
    %cst_101 = arith.constant dense<0.000000e+00> : vector<2x128xf32>
    %441 = tpu.matmul %440, %4, %cst_101 {dimension_numbers = #tpu.dot_dimension_numbers<[1], [0], [0], [1], [0, 0, 1, 1], [], []>} : vector<2x64xf32>, vector<64x128xf32>, vector<2x128xf32> -> vector<2x128xf32>
    %442 = arith.addf %441, %7 : vector<2x128xf32>
    %443 = vector.extract_strided_slice %442 {offsets = [0, 0], sizes = [2, 32], strides = [1, 1]} : vector<2x128xf32> to vector<2x32xf32>
    %444 = arith.negf %443 : vector<2x32xf32>
    %445 = math.exp %444 : vector<2x32xf32>
    %cst_102 = arith.constant 1.000000e+00 : f32
    %446 = vector.broadcast %cst_102 : f32 to vector<2x32xf32>
    %447 = arith.addf %446, %445 : vector<2x32xf32>
    %448 = arith.divf %446, %447 : vector<2x32xf32>
    %449 = vector.extract_strided_slice %442 {offsets = [0, 32], sizes = [2, 32], strides = [1, 1]} : vector<2x128xf32> to vector<2x32xf32>
    %450 = arith.negf %449 : vector<2x32xf32>
    %451 = math.exp %450 : vector<2x32xf32>
    %cst_103 = arith.constant 1.000000e+00 : f32
    %452 = vector.broadcast %cst_103 : f32 to vector<2x32xf32>
    %453 = arith.addf %452, %451 : vector<2x32xf32>
    %454 = arith.divf %452, %453 : vector<2x32xf32>
    %455 = vector.extract_strided_slice %442 {offsets = [0, 64], sizes = [2, 32], strides = [1, 1]} : vector<2x128xf32> to vector<2x32xf32>
    %456 = math.tanh %455 : vector<2x32xf32>
    %457 = vector.extract_strided_slice %442 {offsets = [0, 96], sizes = [2, 32], strides = [1, 1]} : vector<2x128xf32> to vector<2x32xf32>
    %458 = arith.negf %457 : vector<2x32xf32>
    %459 = math.exp %458 : vector<2x32xf32>
    %cst_104 = arith.constant 1.000000e+00 : f32
    %460 = vector.broadcast %cst_104 : f32 to vector<2x32xf32>
    %461 = arith.addf %460, %459 : vector<2x32xf32>
    %462 = arith.divf %460, %461 : vector<2x32xf32>
    %463 = arith.mulf %454, %400 : vector<2x32xf32>
    %464 = arith.mulf %448, %456 : vector<2x32xf32>
    %465 = arith.addf %463, %464 : vector<2x32xf32>
    %466 = math.tanh %465 : vector<2x32xf32>
    %467 = arith.mulf %462, %466 : vector<2x32xf32>
    %cst_105 = arith.constant dense<0.000000e+00> : vector<2x8xf32>
    %468 = tpu.matmul %467, %8, %cst_105 {dimension_numbers = #tpu.dot_dimension_numbers<[1], [0], [0], [1], [0, 0, 1, 1], [], []>} : vector<2x32xf32>, vector<32x8xf32>, vector<2x8xf32> -> vector<2x8xf32>
    %469 = arith.addf %468, %11 : vector<2x8xf32>
    %470 = arith.negf %469 : vector<2x8xf32>
    %471 = math.exp %470 : vector<2x8xf32>
    %cst_106 = arith.constant 1.000000e+00 : f32
    %472 = vector.broadcast %cst_106 : f32 to vector<2x8xf32>
    %473 = arith.addf %472, %471 : vector<2x8xf32>
    %474 = arith.divf %472, %473 : vector<2x8xf32>
    %c0_107 = arith.constant 0 : index
    %c7 = arith.constant 7 : index
    %c0_108 = arith.constant 0 : index
    %475 = vector.load %arg0[%c0_107, %c7, %c0_108] : memref<2x8x16xf32, #tpu.memory_space<vmem>>, vector<2x1x16xf32>
    %476 = vector.shape_cast %475 : vector<2x1x16xf32> to vector<2x16xf32>
    %477 = tpu.concatenate %476, %439 in 1 : vector<2x16xf32>, vector<2x32xf32> -> vector<2x48xf32>
    %cst_109 = arith.constant dense<0.000000e+00> : vector<2x128xf32>
    %478 = tpu.matmul %477, %0, %cst_109 {dimension_numbers = #tpu.dot_dimension_numbers<[1], [0], [0], [1], [0, 0, 1, 1], [], []>} : vector<2x48xf32>, vector<48x128xf32>, vector<2x128xf32> -> vector<2x128xf32>
    %479 = arith.addf %478, %3 : vector<2x128xf32>
    %480 = vector.extract_strided_slice %479 {offsets = [0, 0], sizes = [2, 32], strides = [1, 1]} : vector<2x128xf32> to vector<2x32xf32>
    %481 = arith.negf %480 : vector<2x32xf32>
    %482 = math.exp %481 : vector<2x32xf32>
    %cst_110 = arith.constant 1.000000e+00 : f32
    %483 = vector.broadcast %cst_110 : f32 to vector<2x32xf32>
    %484 = arith.addf %483, %482 : vector<2x32xf32>
    %485 = arith.divf %483, %484 : vector<2x32xf32>
    %486 = vector.extract_strided_slice %479 {offsets = [0, 32], sizes = [2, 32], strides = [1, 1]} : vector<2x128xf32> to vector<2x32xf32>
    %487 = arith.negf %486 : vector<2x32xf32>
    %488 = math.exp %487 : vector<2x32xf32>
    %cst_111 = arith.constant 1.000000e+00 : f32
    %489 = vector.broadcast %cst_111 : f32 to vector<2x32xf32>
    %490 = arith.addf %489, %488 : vector<2x32xf32>
    %491 = arith.divf %489, %490 : vector<2x32xf32>
    %492 = vector.extract_strided_slice %479 {offsets = [0, 64], sizes = [2, 32], strides = [1, 1]} : vector<2x128xf32> to vector<2x32xf32>
    %493 = math.tanh %492 : vector<2x32xf32>
    %494 = vector.extract_strided_slice %479 {offsets = [0, 96], sizes = [2, 32], strides = [1, 1]} : vector<2x128xf32> to vector<2x32xf32>
    %495 = arith.negf %494 : vector<2x32xf32>
    %496 = math.exp %495 : vector<2x32xf32>
    %cst_112 = arith.constant 1.000000e+00 : f32
    %497 = vector.broadcast %cst_112 : f32 to vector<2x32xf32>
    %498 = arith.addf %497, %496 : vector<2x32xf32>
    %499 = arith.divf %497, %498 : vector<2x32xf32>
    %500 = arith.mulf %491, %437 : vector<2x32xf32>
    %501 = arith.mulf %485, %493 : vector<2x32xf32>
    %502 = arith.addf %500, %501 : vector<2x32xf32>
    %503 = math.tanh %502 : vector<2x32xf32>
    %504 = arith.mulf %499, %503 : vector<2x32xf32>
    %505 = tpu.concatenate %504, %467 in 1 : vector<2x32xf32>, vector<2x32xf32> -> vector<2x64xf32>
    %cst_113 = arith.constant dense<0.000000e+00> : vector<2x128xf32>
    %506 = tpu.matmul %505, %4, %cst_113 {dimension_numbers = #tpu.dot_dimension_numbers<[1], [0], [0], [1], [0, 0, 1, 1], [], []>} : vector<2x64xf32>, vector<64x128xf32>, vector<2x128xf32> -> vector<2x128xf32>
    %507 = arith.addf %506, %7 : vector<2x128xf32>
    %508 = vector.extract_strided_slice %507 {offsets = [0, 0], sizes = [2, 32], strides = [1, 1]} : vector<2x128xf32> to vector<2x32xf32>
    %509 = arith.negf %508 : vector<2x32xf32>
    %510 = math.exp %509 : vector<2x32xf32>
    %cst_114 = arith.constant 1.000000e+00 : f32
    %511 = vector.broadcast %cst_114 : f32 to vector<2x32xf32>
    %512 = arith.addf %511, %510 : vector<2x32xf32>
    %513 = arith.divf %511, %512 : vector<2x32xf32>
    %514 = vector.extract_strided_slice %507 {offsets = [0, 32], sizes = [2, 32], strides = [1, 1]} : vector<2x128xf32> to vector<2x32xf32>
    %515 = arith.negf %514 : vector<2x32xf32>
    %516 = math.exp %515 : vector<2x32xf32>
    %cst_115 = arith.constant 1.000000e+00 : f32
    %517 = vector.broadcast %cst_115 : f32 to vector<2x32xf32>
    %518 = arith.addf %517, %516 : vector<2x32xf32>
    %519 = arith.divf %517, %518 : vector<2x32xf32>
    %520 = vector.extract_strided_slice %507 {offsets = [0, 64], sizes = [2, 32], strides = [1, 1]} : vector<2x128xf32> to vector<2x32xf32>
    %521 = math.tanh %520 : vector<2x32xf32>
    %522 = vector.extract_strided_slice %507 {offsets = [0, 96], sizes = [2, 32], strides = [1, 1]} : vector<2x128xf32> to vector<2x32xf32>
    %523 = arith.negf %522 : vector<2x32xf32>
    %524 = math.exp %523 : vector<2x32xf32>
    %cst_116 = arith.constant 1.000000e+00 : f32
    %525 = vector.broadcast %cst_116 : f32 to vector<2x32xf32>
    %526 = arith.addf %525, %524 : vector<2x32xf32>
    %527 = arith.divf %525, %526 : vector<2x32xf32>
    %528 = arith.mulf %519, %465 : vector<2x32xf32>
    %529 = arith.mulf %513, %521 : vector<2x32xf32>
    %530 = arith.addf %528, %529 : vector<2x32xf32>
    %531 = math.tanh %530 : vector<2x32xf32>
    %532 = arith.mulf %527, %531 : vector<2x32xf32>
    %cst_117 = arith.constant dense<0.000000e+00> : vector<2x8xf32>
    %533 = tpu.matmul %532, %8, %cst_117 {dimension_numbers = #tpu.dot_dimension_numbers<[1], [0], [0], [1], [0, 0, 1, 1], [], []>} : vector<2x32xf32>, vector<32x8xf32>, vector<2x8xf32> -> vector<2x8xf32>
    %534 = arith.addf %533, %11 : vector<2x8xf32>
    %535 = arith.negf %534 : vector<2x8xf32>
    %536 = math.exp %535 : vector<2x8xf32>
    %cst_118 = arith.constant 1.000000e+00 : f32
    %537 = vector.broadcast %cst_118 : f32 to vector<2x8xf32>
    %538 = arith.addf %537, %536 : vector<2x8xf32>
    %539 = arith.divf %537, %538 : vector<2x8xf32>
    %540 = tpu.concatenate %84, %149, %214, %279, %344, %409, %474, %539 in 1 : vector<2x8xf32>, vector<2x8xf32>, vector<2x8xf32>, vector<2x8xf32>, vector<2x8xf32>, vector<2x8xf32>, vector<2x8xf32>, vector<2x8xf32> -> vector<2x64xf32>
    %c0_119 = arith.constant 0 : index
    %c0_120 = arith.constant 0 : index
    %541 = vector.load %arg9[%c0_119, %c0_120] : memref<2x64xf32, #tpu.memory_space<vmem>>, vector<2x64xf32>
    tpu.vector_store %arg9[%c0_119, %c0_120], %540 {strides = array<i32>} : memref<2x64xf32, #tpu.memory_space<vmem>>, vector<2x64xf32>,
    %c0_121 = arith.constant 0 : index
    %c0_122 = arith.constant 0 : index
    %c0_123 = arith.constant 0 : index
    %542 = vector.load %arg10[%c0_121, %c0_122, %c0_123] : memref<2x2x32xf32, #tpu.memory_space<vmem>>, vector<1x2x32xf32>
    %543 = vector.shape_cast %542 : vector<1x2x32xf32> to vector<2x32xf32>
    %544 = vector.shape_cast %504 : vector<2x32xf32> to vector<1x2x32xf32>
    tpu.vector_store %arg10[%c0_121, %c0_122, %c0_123], %544 {strides = array<i32>} : memref<2x2x32xf32, #tpu.memory_space<vmem>>, vector<1x2x32xf32>,
    %c0_124 = arith.constant 0 : index
    %c0_125 = arith.constant 0 : index
    %c0_126 = arith.constant 0 : index
    %545 = vector.load %arg11[%c0_124, %c0_125, %c0_126] : memref<2x2x32xf32, #tpu.memory_space<vmem>>, vector<1x2x32xf32>
    %546 = vector.shape_cast %545 : vector<1x2x32xf32> to vector<2x32xf32>
    %547 = vector.shape_cast %502 : vector<2x32xf32> to vector<1x2x32xf32>
    tpu.vector_store %arg11[%c0_124, %c0_125, %c0_126], %547 {strides = array<i32>} : memref<2x2x32xf32, #tpu.memory_space<vmem>>, vector<1x2x32xf32>,
    %c1_127 = arith.constant 1 : index
    %c0_128 = arith.constant 0 : index
    %c0_129 = arith.constant 0 : index
    %548 = vector.load %arg10[%c1_127, %c0_128, %c0_129] : memref<2x2x32xf32, #tpu.memory_space<vmem>>, vector<1x2x32xf32>
    %549 = vector.shape_cast %548 : vector<1x2x32xf32> to vector<2x32xf32>
    %550 = vector.shape_cast %532 : vector<2x32xf32> to vector<1x2x32xf32>
    tpu.vector_store %arg10[%c1_127, %c0_128, %c0_129], %550 {strides = array<i32>} : memref<2x2x32xf32, #tpu.memory_space<vmem>>, vector<1x2x32xf32>,
    %c1_130 = arith.constant 1 : index
    %c0_131 = arith.constant 0 : index
    %c0_132 = arith.constant 0 : index
    %551 = vector.load %arg11[%c1_130, %c0_131, %c0_132] : memref<2x2x32xf32, #tpu.memory_space<vmem>>, vector<1x2x32xf32>
    %552 = vector.shape_cast %551 : vector<1x2x32xf32> to vector<2x32xf32>
    %553 = vector.shape_cast %530 : vector<2x32xf32> to vector<1x2x32xf32>
    tpu.vector_store %arg11[%c1_130, %c0_131, %c0_132], %553 {strides = array<i32>} : memref<2x2x32xf32, #tpu.memory_space<vmem>>, vector<1x2x32xf32>,
    return
  }
}

</mosaic_0001>

<bundles_post_ra>
// kernel: tpu_custom_call.1
= control target key start
LH: loop header
LB: loop body
LE: loop exit
PB: predicated region body
PF: predicated region fallthrough
CT: control target
= control target key end

     0   :  { %17 = vsyncpa [#allocation3], 0  ;;  %s4458_s0 = inlined_call_operand.hbm [shape: f32[2,8,16], index: 0, kind: input, shape index: {}]   ;;  %s4459_s1 = inlined_call_operand.hbm [shape: f32[2,2,32], index: 1, kind: input, shape index: {}]   ;;  %s4460_s2 = inlined_call_operand.hbm [shape: f32[2,2,32], index: 2, kind: input, shape index: {}]   ;;  %s4461_s3 = inlined_call_operand.vmem [shape: f32[48,128], index: 3, kind: input, shape index: {}]   ;;  %s4462_s4 = inlined_call_operand.vmem [shape: f32[1,128], index: 4, kind: input, shape index: {}]   ;;  %s4463_s5 = inlined_call_operand.hbm [shape: f32[64,128], index: 5, kind: input, shape index: {}]   ;;  %s4464_s6 = inlined_call_operand.vmem [shape: f32[1,128], index: 6, kind: input, shape index: {}]   ;;  %s4465_s7 = inlined_call_operand.vmem [shape: f32[32,8], index: 7, kind: input, shape index: {}]   ;;  %s4466_s8 = inlined_call_operand.vmem [shape: f32[1,8], index: 8, kind: input, shape index: {}]   ;;  %s4467_s9 = inlined_call_operand.hbm [shape: f32[2,64], index: 9, kind: output, shape index: {0}]   ;;  %s4468_s10 = inlined_call_operand.hbm [shape: f32[2,2,32], index: 10, kind: output, shape index: {1}]   ;;  %s4469_s11 = inlined_call_operand.hbm [shape: f32[2,2,32], index: 11, kind: output, shape index: {2}]  }
   0x1   :  { %18 = vsyncpa [#allocation6], 0 }
   0x2   :  { %19 = vsyncpa [#allocation9], 0 }
   0x3   :  { %20 = vsyncpa [#allocation4], 0 }
   0x4   :  { %21 = vsyncpa [#allocation12], 0  ;;  %s3751_s17 = smov [#allocation5]   ;;  %s3587_s21 = scalar_lea.hbm %s4459_s1, 64 }
   0x5   :  { %s39_s18 = sshll.u32 %s3751_s17, 4  ;;  %p3588_p0 = scmp.ne.s32.totalorder %s4459_s1, %s3587_s21  ;;  %s40_s18 = int_to_ptr.vmem [resolvable:$true] %s39_s18 }
   0x6   :  { %p3591_p1 = scmp.lt.u32.totalorder %s3587_s21, %s4459_s1 }
   0x8   :  { %p3593_p2 = pnand %p3591_p1, %p3588_p0 }
   0xa   :  { %3596 = shalt.err (!%p3593_p2)
}
   0xb   :  { %s3597_s26 = scalar_lea.vmem %s40_s18, 64  ;;  %p3602_p4 = scmp.lt.s32.totalorder %s40_s18, %s40_s18 }
   0xc   :  { %p3598_p3 = scmp.ne.s32.totalorder %s40_s18, %s3597_s26  ;;  %p3603_p5 = scmp.lt.s32.totalorder %s3597_s26, %s3597_s26 }
   0xe   :  { %p3604_p6 = por %p3603_p5, %p3602_p4 }
  0x10   :  { %p3605_p7 = pnand %p3604_p6, %p3598_p3 }
  0x12   :  { %3608 = shalt.err (!%p3605_p7)
}
  0x13   :  { %s3752_s27 = smov 32   ;;  %s3753_s28 = smov 2  }
  0x14   :  { %45 = dma.hbm_to_vmem [thread:$0]  %s4459_s1, 64, %s40_s18, [#allocation6], %s3752_s27, %s3752_s27, %s3753_s28  }
  0x15   :  { %s3754_s12 = smov [#allocation2]   ;;  %s3609_s16 = scalar_lea.hbm %s4458_s0, 256 }
  0x16   :  { %s27_s13 = sshll.u32 %s3754_s12, 4  ;;  %p3610_p8 = scmp.ne.s32.totalorder %s4458_s0, %s3609_s16  ;;  %s28_s13 = int_to_ptr.vmem [resolvable:$true] %s27_s13 }
  0x17   :  { %p3613_p9 = scmp.lt.u32.totalorder %s3609_s16, %s4458_s0 }
  0x19   :  { %p3615_p10 = pnand %p3613_p9, %p3610_p8 }
  0x1b   :  { %3618 = shalt.err (!%p3615_p10)
}
  0x1c   :  { %s3619_s22 = scalar_lea.vmem %s28_s13, 256  ;;  %p3624_p12 = scmp.lt.s32.totalorder %s28_s13, %s28_s13 }
  0x1d   :  { %p3620_p11 = scmp.ne.s32.totalorder %s28_s13, %s3619_s22  ;;  %p3625_p13 = scmp.lt.s32.totalorder %s3619_s22, %s3619_s22 }
  0x1f   :  { %p3626_p0 = por %p3625_p13, %p3624_p12 }
  0x21   :  { %p3627_p1 = pnand %p3626_p0, %p3620_p11 }
  0x23   :  { %3630 = shalt.err (!%p3627_p1)
}
  0x24   :  { %s3755_s1 = smov 128   ;;  %s3756_s18 = smov 8  }
  0x25   :  { %33 = dma.hbm_to_vmem [thread:$0]  %s4458_s0, 256, %s28_s13, [#allocation3], %s3755_s1, %s3755_s1, %s3756_s18  }
  0x26   :  { %s3757_s25 = smov [#allocation7]   ;;  %s3758_s29 = smov [#allocation8]  }
  0x27   :  { %s51_s26 = sshll.u32 %s3757_s25, 4  ;;  %s67_s30 = sshll.u32 %s3758_s29, 4  ;;  %s52_s26 = int_to_ptr.vmem [resolvable:$true] %s51_s26  ;;  %s3862_s30 = int_to_ptr.vmem [resolvable:$true] %s67_s30 }
  0x28   :  { %s3631_s15 = scalar_lea.hbm %s4460_s2, 64 }
  0x29   :  { %p3632_p2 = scmp.ne.s32.totalorder %s4460_s2, %s3631_s15  ;;  %p3635_p3 = scmp.lt.u32.totalorder %s3631_s15, %s4460_s2 }
  0x2b   :  { %p3637_p4 = pnand %p3635_p3, %p3632_p2 }
  0x2d   :  { %3640 = shalt.err (!%p3637_p4)
}
  0x2e   :  { %s3641_s0 = scalar_lea.vmem %s52_s26, 64  ;;  %p3646_p6 = scmp.lt.s32.totalorder %s52_s26, %s52_s26 }
  0x2f   :  { %p3642_p5 = scmp.ne.s32.totalorder %s52_s26, %s3641_s0  ;;  %p3647_p7 = scmp.lt.s32.totalorder %s3641_s0, %s3641_s0 }
  0x31   :  { %p3648_p8 = por %p3647_p7, %p3646_p6 }
  0x33   :  { %p3649_p9 = pnand %p3648_p8, %p3642_p5 }
  0x35   :  { %3652 = shalt.err (!%p3649_p9)
}
  0x36   :  { %57 = dma.hbm_to_vmem [thread:$0]  %s4460_s2, 64, %s52_s26, [#allocation6], %s3752_s27, %s3752_s27, %s3753_s28  }
  0x37   :  { %s3653_s24 = scalar_lea.hbm %s4463_s5, 1024 }
  0x38   :  { %p3654_p10 = scmp.ne.s32.totalorder %s4463_s5, %s3653_s24  ;;  %p3657_p11 = scmp.lt.u32.totalorder %s3653_s24, %s4463_s5 }
  0x3a   :  { %p3659_p12 = pnand %p3657_p11, %p3654_p10 }
  0x3c   :  { %3662 = shalt.err (!%p3659_p12)
}
  0x3d   :  { %s3663_s15 = scalar_lea.vmem %s3862_s30, 1024  ;;  %p3668_p0 = scmp.lt.s32.totalorder %s3862_s30, %s3862_s30 }
  0x3e   :  { %p3664_p13 = scmp.ne.s32.totalorder %s3862_s30, %s3663_s15  ;;  %p3669_p1 = scmp.lt.s32.totalorder %s3663_s15, %s3663_s15 }
  0x40   :  { %p3670_p2 = por %p3669_p1, %p3668_p0 }
  0x42   :  { %p3671_p3 = pnand %p3670_p2, %p3664_p13 }
  0x44   :  { %3674 = shalt.err (!%p3671_p3)
}
  0x45   :  { %73 = dma.hbm_to_vmem [thread:$0]  %s4463_s5, 1024, %s3862_s30, [#allocation9], %s3755_s1, %s3755_s1, %s3756_s18  }
  0x46   :  { %3741 = dma.done.wait [#allocation3], 256  }
  0x47   :  { %3742 = vsyncadd [#allocation3], 4294967040 }
  0x48   :  { %3743 = dma.done.wait [#allocation6], 128  }
  0x49   :  { %3744 = vsyncadd [#allocation6], 4294967168 }
  0x4a   :  { %3745 = dma.done.wait [#allocation9], 1024  }
  0x4b   :  { %3746 = vsyncadd [#allocation9], 4294966272  ;;  %v3759_v0 = vmov 0.0|0.0   ;;  %vm3760_vm0 = vmmov 0   ;;  %v3761_v1 = vmov 0.0   ;;  %v92_v3 = vld [vmem:[%s4461_s3] sm:$0xff] }
  0x4c   :  { %3188 = vmatprep.subr.bf16.mxu0 %v3759_v0  ;;  %3197 = vmatprep.subr.bf16.mxu1 %v3759_v0  ;;  %v131_v2 = vld [vmem:[#allocation5] sm:$0x3]  ;;  %v93_v4 = vld [vmem:[%s4461_s3 + $0x8] sm:$0xff]  ;;  %s3762_s17 = smov 16   ;;  %v95_v7 = vld [vmem:[%s4461_s3 + $0x18] sm:$0xff]  ;;  %vm142_vm1 = vcmask 1041409  }
  0x4d   :  { %2840 = vmatprep.mubr.msk.f32.mxu0 %vm3760_vm0, %v3761_v1  ;;  %2859 = vmatprep.mubr.msk.f32.mxu1 %vm3760_vm0, %v3761_v1  ;;  %v3912_v5 = vpack.c.bf16 %v93_v4, %v92_v3  ;;  %v94_v6 = vld [vmem:[%s4461_s3 + $0x10] sm:$0xff]  ;;  %v96_v10 = vld [vmem:[%s4461_s3 + $0x20] sm:$0xff]  ;;  %v97_v11 = vld [vmem:[%s4461_s3 + $0x28] sm:$0xff]  ;;  %vm149_vm2 = vcmask 130048   ;;  %vm151_vm3 = vcmask 392192   ;;  %s3763_s29 = smov 64  }
  0x4e   :  { %146 = vrot.lane.b32.xlu0 %v131_v2, %s3762_s17  ;;  %v3921_v8 = vpack.c.bf16 %v95_v7, %v94_v6  ;;  %v134_v9 = vld [vmem:[#allocation7] sm:$0x3]  ;;  %v3932_v12 = vpack.c.bf16 %v97_v11, %v96_v10  ;;  %v138_v13 = vld [vmem:[#allocation2 + $0x8] sm:$0x1]  ;;  %v137_v15 = vld [vmem:[#allocation2] sm:$0x1] }
  0x4f   :  { %3190 = vmatpush3.bf16.msra.mxu0 %v3912_v5  ;;  %233 = vrot.lane.b32.xlu1 %v134_v9, %s3752_s27  ;;  %v141_v14 = vrot.slane %v138_v13, 7  ;;  %v3945_v19 = vld [vmem:[%s4462_s4] ss:$0 sm:$0xff]  ;;  %v105_v34 = vld [vmem:[#allocation8] sm:$0xff]  ;;  %v107_v36 = vld [vmem:[#allocation8 + $0x10] sm:$0xff]  ;;  %s3764_s12 = smov 48  }
  0x50   :  { %3191 = vmatprep.subr.bf16.mxu0 %v3759_v0  ;;  %v106_v35 = vld [vmem:[#allocation8 + $0x8] sm:$0xff]  ;;  %v108_v38 = vld [vmem:[#allocation8 + $0x18] sm:$0xff]  ;;  %v109_v40 = vld [vmem:[#allocation8 + $0x20] sm:$0xff]  ;;  %vm261_vm4 = vcmask 261120   ;;  %vm263_vm5 = vcmask 523264   ;;  %vm2545_vm6 = vcmask 254976  }
  0x51   :  { %v143_v16 = vsel %vm142_vm1, %v141_v14, %v137_v15  ;;  %v3953_v37 = vpack.c.bf16 %v106_v35, %v105_v34  ;;  %v3956_v39 = vpack.c.bf16 %v108_v38, %v107_v36  ;;  %v110_v41 = vld [vmem:[#allocation8 + $0x28] sm:$0xff]  ;;  %v133_v44 = vld [vmem:[#allocation5 + $0x2] sm:$0x3]  ;;  %v111_v45 = vld [vmem:[#allocation8 + $0x30] sm:$0xff]  ;;  %s3766_s22 = smov 40   ;;  %vm2532_vm7 = vcmask 64512  }
  0x52   :  { %v3961_v43 = vpack.c.bf16 %v110_v41, %v109_v40  ;;  %v112_v46 = vld [vmem:[#allocation8 + $0x38] sm:$0xff]  ;;  %v447_v53 = vld [vmem:[#allocation2 + $0x9] sm:$0x1]  ;;  %v446_v55 = vld [vmem:[#allocation2 + $0x1] sm:$0x1]  ;;  %vm2535_vm8 = vcmask 195584  }
  0x53   :  { %3193 = vmatpush3.bf16.msra.mxu0 %v3921_v8  ;;  %3199 = vmatpush3.bf16.msra.mxu1 %v3953_v37  ;;  %v3966_v47 = vpack.c.bf16 %v112_v46, %v111_v45  ;;  %v450_v54 = vrot.slane %v447_v53, 7  ;;  %v3991_v59 = vld [vmem:[%s4464_s6] ss:$0 sm:$0xff]  ;;  %v136_v6 = vld [vmem:[#allocation7 + $0x2] sm:$0x3]  ;;  %v123_v35 = vld [vmem:[%s4465_s7 + $0x18] sm:$0xff] }
  0x54   :  { %3194 = vmatprep.subr.bf16.mxu0 %v3759_v0  ;;  %3200 = vmatprep.subr.bf16.mxu1 %v3759_v0  ;;  %vm2538_vm9 = vcmask 326656  }
  0x55   :  { %v451_v56 = vsel %vm142_vm1, %v450_v54, %v446_v55 }
  0x57   :  { %3196 = vmatpush3.bf16.msra.mxu0 %v3932_v12  ;;  %3202 = vmatpush3.bf16.msra.mxu1 %v3956_v39 }
  0x58   :  { %3209 = vmatprep.subr.bf16.mxu0 %v3759_v0  ;;  %3203 = vmatprep.subr.bf16.mxu1 %v3759_v0 }
  0x5b   :  { %3205 = vmatpush3.bf16.msra.mxu1 %v3961_v43 }
  0x5c   :  { %3206 = vmatprep.subr.bf16.mxu1 %v3759_v0 }
  0x5f   :  { %3208 = vmatpush3.bf16.msra.mxu1 %v3966_v47 }
  0x60   :  { %3215 = vmatprep.subr.bf16.mxu1 %v3759_v0 }
  0xc0   :  { %v147_v17 = vpop.permute.xlu0 %146 }
  0xc1   :  { %v150_v18 = vsel %vm149_vm2, %v143_v16, %v147_v17  ;;  %v234_v30 = vpop.permute.xlu1 %233 }
  0xc2   :  { %2841 = vmatmul.mubr.msk.f32.vlgmr.msra.gmra.mrb[0].mxu0 %vm151_vm3, %v150_v18 }
  0xc3   :  { %2870 = vmatprep.mubr.msk.f32.mxu0 %vm3760_vm0, %v3761_v1 }
 0x195   :  { %v221_v20 = vpop.f32.mrb[0].mxu0 }
 0x196   :  { %v222_v21 = vadd.f32 %v3945_v19, %v221_v20  ;;  %v2842_v22 = vpop.f32.mrb[1].mxu0 }
 0x198   :  { %3425 = vtanh.f32 %v222_v21  ;;  %v2613_v24 = vmul.f32 -1.442695, %v222_v21 }
 0x19a   :  { %3427 = vpow2.f32 %v2613_v24 }
 0x1a2   :  { %v3426_v23 = vpop.eup %3425 }
 0x1a3   :  { %238 = vrot.lane.b32.xlu0 %v3426_v23, %s3763_s29 }
 0x1a4   :  { %v3428_v25 = vpop.eup %3427 }
 0x1a5   :  { %v228_v26 = vadd.f32 1.0, %v3428_v25 }
 0x1a7   :  { %3429 = vrcp.f32 %v228_v26 }
 0x1b1   :  { %v3430_v27 = vpop.eup %3429 }
 0x1b2   :  { %v236_v31 = vmul.f32 %v3430_v27, %v234_v30 }
 0x215   :  { %v239_v28 = vpop.permute.xlu0 %238 }
 0x216   :  { %v241_v29 = vmul.f32 %v3430_v27, %v239_v28 }
 0x218   :  { %243 = vrot.lane.b32.xlu1 %v241_v29, %s3752_s27 }
 0x28a   :  { %v244_v32 = vpop.permute.xlu1 %243 }
 0x28b   :  { %v3950_v33 = vadd.f32 %v244_v32, %v236_v31  ;;  %v120_v31 = vld [vmem:[%s4465_s7] sm:$0xff]  ;;  %v121_v32 = vld [vmem:[%s4465_s7 + $0x8] sm:$0xff] }
 0x28c   :  { %v4017_v34 = vpack.c.bf16 %v121_v32, %v120_v31 }
 0x28d   :  { %3431 = vtanh.f32 %v3950_v33 }
 0x28e   :  { %3211 = vmatpush3.bf16.msra.mxu0 %v4017_v34 }
 0x28f   :  { %3212 = vmatprep.subr.bf16.mxu0 %v3759_v0 }
 0x297   :  { %v3432_v42 = vpop.eup %3431 }
 0x298   :  { %249 = vrot.lane.b32.xlu0 %v3432_v42, %s3763_s29 }
 0x29c   :  { %258 = vrot.lane.b32.xlu0 %v133_v44, %s3752_s27 }
 0x30a   :  { %v250_v48 = vpop.permute.xlu0 %249 }
 0x30b   :  { %v252_v49 = vmul.f32 %v3430_v27, %v250_v48 }
 0x30d   :  { %254 = vrot.lane.b32.xlu1 %v252_v49, %s3752_s27 }
 0x30e   :  { %v259_v50 = vpop.permute.xlu0 %258 }
 0x311   :  { %453 = vrot.lane.b32.xlu1 %v252_v49, %s3764_s12 }
 0x37f   :  { %v255_v51 = vpop.permute.xlu1 %254 }
 0x380   :  { %v262_v52 = vsel %vm261_vm4, %v255_v51, %v259_v50  ;;  %v741_v50 = vld [vmem:[#allocation2 + $0xa] sm:$0x1] }
 0x381   :  { %2860 = vmatmul.mubr.msk.f32.vlgmr.msra.gmra.mrb[0].mxu1 %vm263_vm5, %v262_v52  ;;  %v744_v51 = vrot.slane %v741_v50, 7  ;;  %v740_v52 = vld [vmem:[#allocation2 + $0x2] sm:$0x1] }
 0x382   :  { %3217 = vmatpush3.bf16.msra.mxu1 %v3912_v5  ;;  %2885 = vmatprep.mubr.msk.f32.mxu1 %vm3760_vm0, %v3761_v1 }
 0x383   :  { %3218 = vmatprep.subr.bf16.mxu1 %v3759_v0  ;;  %v454_v57 = vpop.permute.xlu1 %453  ;;  %v745_v53 = vsel %vm142_vm1, %v744_v51, %v740_v52 }
 0x384   :  { %v456_v58 = vsel %vm149_vm2, %v451_v56, %v454_v57 }
 0x386   :  { %3220 = vmatpush3.bf16.msra.mxu1 %v3921_v8 }
 0x387   :  { %3221 = vmatprep.subr.bf16.mxu1 %v3759_v0 }
 0x38a   :  { %3223 = vmatpush3.bf16.msra.mxu1 %v3932_v12 }
 0x38b   :  { %3236 = vmatprep.subr.bf16.mxu1 %v3759_v0 }
 0x38d   :  { %2886 = vmatmul.mubr.msk.f32.vlgmr.msra.gmra.mrb[2].mxu1 %vm151_vm3, %v456_v58 }
 0x38e   :  { %2915 = vmatprep.mubr.msk.f32.mxu1 %vm3760_vm0, %v3761_v1  ;;  %3238 = vmatpush3.bf16.msra.mxu1 %v4017_v34 }
 0x38f   :  { %3239 = vmatprep.subr.bf16.mxu1 %v3759_v0 }
 0x454   :  { %v333_v60 = vpop.f32.mrb[0].mxu1 }
 0x455   :  { %v334_v61 = vadd.f32 %v3991_v59, %v333_v60  ;;  %v2861_v62 = vpop.f32.mrb[1].mxu1 }
 0x457   :  { %3433 = vtanh.f32 %v334_v61  ;;  %v2615_v9 = vmul.f32 -1.442695, %v334_v61 }
 0x460   :  { %v526_v63 = vpop.f32.mrb[2].mxu1 }
 0x461   :  { %v3434_v2 = vpop.eup %3433  ;;  %v527_v3 = vadd.f32 %v3945_v19, %v526_v63  ;;  %v2887_v4 = vpop.f32.mrb[3].mxu1 }
 0x462   :  { %350 = vrot.lane.b32.xlu0 %v3434_v2, %s3763_s29 }
 0x463   :  { %3435 = vtanh.f32 %v527_v3  ;;  %v2619_v10 = vmul.f32 -1.442695, %v527_v3 }
 0x464   :  { %3437 = vpow2.f32 %v2615_v9 }
 0x465   :  { %3439 = vpow2.f32 %v2619_v10 }
 0x466   :  { %345 = vrot.lane.b32.xlu0 %v136_v6, %s3752_s27 }
 0x46d   :  { %v3436_v7 = vpop.eup %3435 }
 0x46e   :  { %539 = vrot.lane.b32.xlu1 %v3436_v7, %s3763_s29  ;;  %v3438_v11 = vpop.eup %3437 }
 0x46f   :  { %v340_v13 = vadd.f32 1.0, %v3438_v11  ;;  %v3440_v14 = vpop.eup %3439 }
 0x470   :  { %v533_v15 = vadd.f32 1.0, %v3440_v14 }
 0x471   :  { %3441 = vrcp.f32 %v340_v13 }
 0x472   :  { %3443 = vrcp.f32 %v533_v15 }
 0x47b   :  { %v3442_v16 = vpop.eup %3441 }
 0x47c   :  { %v3444_v20 = vpop.eup %3443 }
 0x47d   :  { %v537_v27 = vmul.f32 %v3444_v20, %v3950_v33  ;;  %v122_v33 = vld [vmem:[%s4465_s7 + $0x10] sm:$0xff] }
 0x47e   :  { %v4023_v36 = vpack.c.bf16 %v123_v35, %v122_v33 }
 0x480   :  { %3214 = vmatpush3.bf16.msra.mxu0 %v4023_v36  ;;  %3241 = vmatpush3.bf16.msra.mxu1 %v4023_v36 }
 0x481   :  { %3224 = vmatprep.subr.bf16.mxu0 %v3759_v0  ;;  %3251 = vmatprep.subr.bf16.mxu1 %v3759_v0 }
 0x4d4   :  { %v351_v17 = vpop.permute.xlu0 %350 }
 0x4d5   :  { %v353_v18 = vmul.f32 %v3442_v16, %v351_v17 }
 0x4d7   :  { %355 = vrot.lane.b32.xlu1 %v353_v18, %s3752_s27 }
 0x4d8   :  { %v346_v23 = vpop.permute.xlu0 %345 }
 0x4d9   :  { %v348_v24 = vmul.f32 %v3442_v16, %v346_v23 }
 0x4e0   :  { %v540_v21 = vpop.permute.xlu1 %539 }
 0x4e1   :  { %v542_v22 = vmul.f32 %v3444_v20, %v540_v21 }
 0x4e3   :  { %544 = vrot.lane.b32.xlu0 %v542_v22, %s3752_s27 }
 0x549   :  { %v356_v25 = vpop.permute.xlu1 %355 }
 0x54a   :  { %v4000_v26 = vadd.f32 %v356_v25, %v348_v24 }
 0x54c   :  { %3445 = vtanh.f32 %v4000_v26 }
 0x555   :  { %v545_v28 = vpop.permute.xlu0 %544 }
 0x556   :  { %v3446_v29 = vpop.eup %3445  ;;  %v4004_v30 = vadd.f32 %v545_v28, %v537_v27 }
 0x557   :  { %361 = vrot.lane.b32.xlu1 %v3446_v29, %s3763_s29 }
 0x558   :  { %3447 = vtanh.f32 %v4004_v30 }
 0x562   :  { %v3448_v38 = vpop.eup %3447 }
 0x563   :  { %550 = vrot.lane.b32.xlu0 %v3448_v38, %s3763_s29 }
 0x5c9   :  { %v362_v40 = vpop.permute.xlu1 %361 }
 0x5ca   :  { %v364_v41 = vmul.f32 %v3442_v16, %v362_v40 }
 0x5cc   :  { %366 = vrot.lane.b32.xlu1 %v364_v41, %s3752_s27 }
 0x5d0   :  { %558 = vrot.lane.b32.xlu1 %v364_v41, %s3763_s29  ;;  %v1035_v41 = vld [vmem:[#allocation2 + $0xb] sm:$0x1] }
 0x5d5   :  { %v551_v42 = vpop.permute.xlu0 %550 }
 0x5d6   :  { %v553_v44 = vmul.f32 %v3444_v20, %v551_v42  ;;  %v1038_v42 = vrot.slane %v1035_v41, 7 }
 0x5d8   :  { %555 = vrot.lane.b32.xlu0 %v553_v44, %s3752_s27 }
 0x5dc   :  { %747 = vrot.lane.b32.xlu0 %v553_v44, %s3764_s12  ;;  %v1034_v44 = vld [vmem:[#allocation2 + $0x3] sm:$0x1] }
 0x63e   :  { %v367_v45 = vpop.permute.xlu1 %366 }
 0x63f   :  { %2871 = vmatmul.mubr.msk.f32.vlgmr.msra.gmra.mrb[2].mxu0 %vm261_vm4, %v367_v45  ;;  %v1039_v45 = vsel %vm142_vm1, %v1038_v42, %v1034_v44 }
 0x640   :  { %3226 = vmatpush3.bf16.msra.mxu0 %v3953_v37  ;;  %2904 = vmatprep.mubr.msk.f32.mxu0 %vm3760_vm0, %v3761_v1 }
 0x641   :  { %3227 = vmatprep.subr.bf16.mxu0 %v3759_v0 }
 0x642   :  { %v559_v48 = vpop.permute.xlu1 %558 }
 0x644   :  { %3229 = vmatpush3.bf16.msra.mxu0 %v3956_v39 }
 0x645   :  { %3230 = vmatprep.subr.bf16.mxu0 %v3759_v0 }
 0x648   :  { %3232 = vmatpush3.bf16.msra.mxu0 %v3961_v43 }
 0x649   :  { %3233 = vmatprep.subr.bf16.mxu0 %v3759_v0 }
 0x64a   :  { %v556_v46 = vpop.permute.xlu0 %555 }
 0x64b   :  { %v561_v49 = vsel %vm261_vm4, %v556_v46, %v559_v48 }
 0x64c   :  { %3235 = vmatpush3.bf16.msra.mxu0 %v3966_v47 }
 0x64d   :  { %3242 = vmatprep.subr.bf16.mxu0 %v3759_v0 }
 0x64e   :  { %v748_v54 = vpop.permute.xlu0 %747 }
 0x64f   :  { %2905 = vmatmul.mubr.msk.f32.vlgmr.msra.gmra.mrb[4].mxu0 %vm263_vm5, %v561_v49  ;;  %v750_v55 = vsel %vm149_vm2, %v745_v53, %v748_v54 }
 0x650   :  { %3244 = vmatpush3.bf16.msra.mxu0 %v3912_v5  ;;  %2930 = vmatprep.mubr.msk.f32.mxu0 %vm3760_vm0, %v3761_v1 }
 0x651   :  { %3245 = vmatprep.subr.bf16.mxu0 %v3759_v0 }
 0x654   :  { %3247 = vmatpush3.bf16.msra.mxu0 %v3921_v8 }
 0x655   :  { %3248 = vmatprep.subr.bf16.mxu0 %v3759_v0 }
 0x658   :  { %3250 = vmatpush3.bf16.msra.mxu0 %v3932_v12 }
 0x659   :  { %3263 = vmatprep.subr.bf16.mxu0 %v3759_v0 }
 0x65b   :  { %2931 = vmatmul.mubr.msk.f32.vlgmr.msra.gmra.mrb[6].mxu0 %vm151_vm3, %v750_v55 }
 0x65c   :  { %3265 = vmatpush3.bf16.msra.mxu0 %v4017_v34  ;;  %2960 = vmatprep.mubr.msk.f32.mxu0 %vm3760_vm0, %v3761_v1 }
 0x65d   :  { %3266 = vmatprep.subr.bf16.mxu0 %v3759_v0 }
 0x660   :  { %3268 = vmatpush3.bf16.msra.mxu0 %v4023_v36 }
 0x661   :  { %3278 = vmatprep.subr.bf16.mxu0 %v3759_v0 }
 0x712   :  { %v4067_v56 = vpop.f32.mrb[2].mxu0 }
 0x713   :  { %v2872_v57 = vpop.f32.mrb[3].mxu0 }
 0x722   :  { %v631_v58 = vpop.f32.mrb[4].mxu0 }
 0x723   :  { %v632_v60 = vadd.f32 %v3991_v59, %v631_v58  ;;  %v2906_v61 = vpop.f32.mrb[5].mxu0 }
 0x725   :  { %3449 = vtanh.f32 %v632_v60  ;;  %v2621_v6 = vmul.f32 -1.442695, %v632_v60 }
 0x72e   :  { %v820_v62 = vpop.f32.mrb[6].mxu0 }
 0x72f   :  { %v3450_v63 = vpop.eup %3449  ;;  %v821_v2 = vadd.f32 %v3945_v19, %v820_v62  ;;  %v2932_v3 = vpop.f32.mrb[7].mxu0 }
 0x730   :  { %644 = vrot.lane.b32.xlu1 %v3450_v63, %s3763_s29 }
 0x731   :  { %3451 = vtanh.f32 %v821_v2  ;;  %v2625_v7 = vmul.f32 -1.442695, %v821_v2 }
 0x732   :  { %3453 = vpow2.f32 %v2621_v6 }
 0x733   :  { %3455 = vpow2.f32 %v2625_v7 }
 0x73b   :  { %v3452_v4 = vpop.eup %3451 }
 0x73c   :  { %833 = vrot.lane.b32.xlu0 %v3452_v4, %s3763_s29  ;;  %v3454_v9 = vpop.eup %3453 }
 0x73d   :  { %v638_v10 = vadd.f32 1.0, %v3454_v9  ;;  %v3456_v11 = vpop.eup %3455 }
 0x73e   :  { %v827_v13 = vadd.f32 1.0, %v3456_v11 }
 0x73f   :  { %3457 = vrcp.f32 %v638_v10 }
 0x740   :  { %3459 = vrcp.f32 %v827_v13 }
 0x749   :  { %v3458_v14 = vpop.eup %3457 }
 0x74a   :  { %v3460_v17 = vpop.eup %3459  ;;  %v642_v21 = vmul.f32 %v3458_v14, %v4000_v26 }
 0x74b   :  { %v831_v24 = vmul.f32 %v3460_v17, %v4004_v30 }
 0x7a2   :  { %v645_v15 = vpop.permute.xlu1 %644 }
 0x7a3   :  { %v647_v16 = vmul.f32 %v3458_v14, %v645_v15 }
 0x7a5   :  { %649 = vrot.lane.b32.xlu1 %v647_v16, %s3752_s27 }
 0x7ae   :  { %v834_v18 = vpop.permute.xlu0 %833 }
 0x7af   :  { %v836_v20 = vmul.f32 %v3460_v17, %v834_v18 }
 0x7b1   :  { %838 = vrot.lane.b32.xlu0 %v836_v20, %s3752_s27 }
 0x817   :  { %v650_v22 = vpop.permute.xlu1 %649 }
 0x818   :  { %v4076_v23 = vadd.f32 %v650_v22, %v642_v21 }
 0x81a   :  { %3461 = vtanh.f32 %v4076_v23 }
 0x823   :  { %v839_v25 = vpop.permute.xlu0 %838 }
 0x824   :  { %v3462_v27 = vpop.eup %3461  ;;  %v4080_v28 = vadd.f32 %v839_v25, %v831_v24 }
 0x825   :  { %655 = vrot.lane.b32.xlu1 %v3462_v27, %s3763_s29 }
 0x826   :  { %3463 = vtanh.f32 %v4080_v28 }
 0x830   :  { %v3464_v29 = vpop.eup %3463 }
 0x831   :  { %844 = vrot.lane.b32.xlu0 %v3464_v29, %s3763_s29 }
 0x897   :  { %v656_v31 = vpop.permute.xlu1 %655 }
 0x898   :  { %v658_v26 = vmul.f32 %v3458_v14, %v656_v31 }
 0x89a   :  { %660 = vrot.lane.b32.xlu1 %v658_v26, %s3752_s27 }
 0x89e   :  { %852 = vrot.lane.b32.xlu1 %v658_v26, %s3763_s29 }
 0x8a3   :  { %v845_v32 = vpop.permute.xlu0 %844 }
 0x8a4   :  { %v847_v33 = vmul.f32 %v3460_v17, %v845_v32  ;;  %v1329_v32 = vld [vmem:[#allocation2 + $0xc] sm:$0x1] }
 0x8a6   :  { %849 = vrot.lane.b32.xlu0 %v847_v33, %s3752_s27 }
 0x8aa   :  { %1041 = vrot.lane.b32.xlu0 %v847_v33, %s3764_s12  ;;  %v1332_v33 = vrot.slane %v1329_v32, 7 }
 0x90c   :  { %v661_v30 = vpop.permute.xlu1 %660 }
 0x90d   :  { %2916 = vmatmul.mubr.msk.f32.vlgmr.msra.gmra.mrb[4].mxu1 %vm261_vm4, %v661_v30  ;;  %v1328_v30 = vld [vmem:[#allocation2 + $0x4] sm:$0x1] }
 0x90e   :  { %3253 = vmatpush3.bf16.msra.mxu1 %v3953_v37  ;;  %2949 = vmatprep.mubr.msk.f32.mxu1 %vm3760_vm0, %v3761_v1 }
 0x90f   :  { %3254 = vmatprep.subr.bf16.mxu1 %v3759_v0 }
 0x910   :  { %v853_v38 = vpop.permute.xlu1 %852 }
 0x912   :  { %3256 = vmatpush3.bf16.msra.mxu1 %v3956_v39 }
 0x913   :  { %3257 = vmatprep.subr.bf16.mxu1 %v3759_v0 }
 0x916   :  { %3259 = vmatpush3.bf16.msra.mxu1 %v3961_v43 }
 0x917   :  { %3260 = vmatprep.subr.bf16.mxu1 %v3759_v0 }
 0x918   :  { %v850_v35 = vpop.permute.xlu0 %849 }
 0x919   :  { %v855_v40 = vsel %vm261_vm4, %v850_v35, %v853_v38  ;;  %v1333_v35 = vsel %vm142_vm1, %v1332_v33, %v1328_v30 }
 0x91a   :  { %3262 = vmatpush3.bf16.msra.mxu1 %v3966_v47 }
 0x91b   :  { %3269 = vmatprep.subr.bf16.mxu1 %v3759_v0 }
 0x91c   :  { %v1042_v46 = vpop.permute.xlu0 %1041 }
 0x91d   :  { %2950 = vmatmul.mubr.msk.f32.vlgmr.msra.gmra.mrb[6].mxu1 %vm263_vm5, %v855_v40  ;;  %v1044_v48 = vsel %vm149_vm2, %v1039_v45, %v1042_v46 }
 0x91e   :  { %3271 = vmatpush3.bf16.msra.mxu1 %v3912_v5  ;;  %2975 = vmatprep.mubr.msk.f32.mxu1 %vm3760_vm0, %v3761_v1 }
 0x91f   :  { %3272 = vmatprep.subr.bf16.mxu1 %v3759_v0 }
 0x922   :  { %3274 = vmatpush3.bf16.msra.mxu1 %v3921_v8 }
 0x923   :  { %3275 = vmatprep.subr.bf16.mxu1 %v3759_v0 }
 0x926   :  { %3277 = vmatpush3.bf16.msra.mxu1 %v3932_v12 }
 0x927   :  { %3290 = vmatprep.subr.bf16.mxu1 %v3759_v0 }
 0x929   :  { %2976 = vmatmul.mubr.msk.f32.vlgmr.msra.gmra.mrb[8].mxu1 %vm151_vm3, %v1044_v48 }
 0x92a   :  { %3292 = vmatpush3.bf16.msra.mxu1 %v4017_v34  ;;  %3005 = vmatprep.mubr.msk.f32.mxu1 %vm3760_vm0, %v3761_v1 }
 0x92b   :  { %3293 = vmatprep.subr.bf16.mxu1 %v3759_v0 }
 0x92e   :  { %3295 = vmatpush3.bf16.msra.mxu1 %v4023_v36 }
 0x92f   :  { %3305 = vmatprep.subr.bf16.mxu1 %v3759_v0 }
 0x9e0   :  { %v4119_v49 = vpop.f32.mrb[4].mxu1 }
 0x9e1   :  { %v2917_v50 = vpop.f32.mrb[5].mxu1 }
 0x9f0   :  { %v925_v51 = vpop.f32.mrb[6].mxu1 }
 0x9f1   :  { %v926_v52 = vadd.f32 %v3991_v59, %v925_v51  ;;  %v2951_v53 = vpop.f32.mrb[7].mxu1 }
 0x9f3   :  { %3465 = vtanh.f32 %v926_v52  ;;  %v2627_v61 = vmul.f32 -1.442695, %v926_v52 }
 0x9fc   :  { %v1114_v54 = vpop.f32.mrb[8].mxu1 }
 0x9fd   :  { %v3466_v55 = vpop.eup %3465  ;;  %v1115_v57 = vadd.f32 %v3945_v19, %v1114_v54  ;;  %v2977_v58 = vpop.f32.mrb[9].mxu1 }
 0x9fe   :  { %938 = vrot.lane.b32.xlu1 %v3466_v55, %s3763_s29 }
 0x9ff   :  { %3467 = vtanh.f32 %v1115_v57  ;;  %v2631_v62 = vmul.f32 -1.442695, %v1115_v57 }
 0xa00   :  { %3469 = vpow2.f32 %v2627_v61 }
 0xa01   :  { %3471 = vpow2.f32 %v2631_v62 }
 0xa09   :  { %v3468_v60 = vpop.eup %3467 }
 0xa0a   :  { %1127 = vrot.lane.b32.xlu0 %v3468_v60, %s3763_s29  ;;  %v3470_v63 = vpop.eup %3469 }
 0xa0b   :  { %v932_v2 = vadd.f32 1.0, %v3470_v63  ;;  %v3472_v3 = vpop.eup %3471 }
 0xa0c   :  { %v1121_v4 = vadd.f32 1.0, %v3472_v3 }
 0xa0d   :  { %3473 = vrcp.f32 %v932_v2 }
 0xa0e   :  { %3475 = vrcp.f32 %v1121_v4 }
 0xa17   :  { %v3474_v6 = vpop.eup %3473 }
 0xa18   :  { %v3476_v10 = vpop.eup %3475  ;;  %v936_v14 = vmul.f32 %v3474_v6, %v4076_v23 }
 0xa19   :  { %v1125_v17 = vmul.f32 %v3476_v10, %v4080_v28 }
 0xa70   :  { %v939_v7 = vpop.permute.xlu1 %938 }
 0xa71   :  { %v941_v9 = vmul.f32 %v3474_v6, %v939_v7 }
 0xa73   :  { %943 = vrot.lane.b32.xlu1 %v941_v9, %s3752_s27 }
 0xa7c   :  { %v1128_v11 = vpop.permute.xlu0 %1127 }
 0xa7d   :  { %v1130_v13 = vmul.f32 %v3476_v10, %v1128_v11 }
 0xa7f   :  { %1132 = vrot.lane.b32.xlu0 %v1130_v13, %s3752_s27 }
 0xae5   :  { %v944_v15 = vpop.permute.xlu1 %943 }
 0xae6   :  { %v4128_v16 = vadd.f32 %v944_v15, %v936_v14 }
 0xae8   :  { %3477 = vtanh.f32 %v4128_v16 }
 0xaf1   :  { %v1133_v18 = vpop.permute.xlu0 %1132 }
 0xaf2   :  { %v3478_v20 = vpop.eup %3477  ;;  %v4132_v21 = vadd.f32 %v1133_v18, %v1125_v17 }
 0xaf3   :  { %949 = vrot.lane.b32.xlu1 %v3478_v20, %s3763_s29 }
 0xaf4   :  { %3479 = vtanh.f32 %v4132_v21 }
 0xafe   :  { %v3480_v22 = vpop.eup %3479 }
 0xaff   :  { %1138 = vrot.lane.b32.xlu0 %v3480_v22, %s3763_s29 }
 0xb65   :  { %v950_v24 = vpop.permute.xlu1 %949 }
 0xb66   :  { %v952_v23 = vmul.f32 %v3474_v6, %v950_v24 }
 0xb68   :  { %954 = vrot.lane.b32.xlu1 %v952_v23, %s3752_s27 }
 0xb6c   :  { %1146 = vrot.lane.b32.xlu1 %v952_v23, %s3763_s29 }
 0xb71   :  { %v1139_v25 = vpop.permute.xlu0 %1138 }
 0xb72   :  { %v1141_v27 = vmul.f32 %v3476_v10, %v1139_v25 }
 0xb74   :  { %1143 = vrot.lane.b32.xlu0 %v1141_v27, %s3752_s27 }
 0xb78   :  { %1335 = vrot.lane.b32.xlu0 %v1141_v27, %s3764_s12  ;;  %v1623_v27 = vld [vmem:[#allocation2 + $0xd] sm:$0x1] }
 0xbda   :  { %v955_v28 = vpop.permute.xlu1 %954 }
 0xbdb   :  { %2961 = vmatmul.mubr.msk.f32.vlgmr.msra.gmra.mrb[8].mxu0 %vm261_vm4, %v955_v28  ;;  %v1626_v28 = vrot.slane %v1623_v27, 7 }
 0xbdc   :  { %3280 = vmatpush3.bf16.msra.mxu0 %v3953_v37  ;;  %2994 = vmatprep.mubr.msk.f32.mxu0 %vm3760_vm0, %v3761_v1 }
 0xbdd   :  { %3281 = vmatprep.subr.bf16.mxu0 %v3759_v0 }
 0xbde   :  { %v1147_v31 = vpop.permute.xlu1 %1146 }
 0xbe0   :  { %3283 = vmatpush3.bf16.msra.mxu0 %v3956_v39 }
 0xbe1   :  { %3284 = vmatprep.subr.bf16.mxu0 %v3759_v0 }
 0xbe4   :  { %3286 = vmatpush3.bf16.msra.mxu0 %v3961_v43 }
 0xbe5   :  { %3287 = vmatprep.subr.bf16.mxu0 %v3759_v0 }
 0xbe6   :  { %v1144_v29 = vpop.permute.xlu0 %1143 }
 0xbe7   :  { %v1149_v26 = vsel %vm261_vm4, %v1144_v29, %v1147_v31  ;;  %v1622_v29 = vld [vmem:[#allocation2 + $0x5] sm:$0x1] }
 0xbe8   :  { %3289 = vmatpush3.bf16.msra.mxu0 %v3966_v47  ;;  %v1627_v31 = vsel %vm142_vm1, %v1626_v28, %v1622_v29 }
 0xbe9   :  { %3296 = vmatprep.subr.bf16.mxu0 %v3759_v0 }
 0xbea   :  { %v1336_v38 = vpop.permute.xlu0 %1335 }
 0xbeb   :  { %2995 = vmatmul.mubr.msk.f32.vlgmr.msra.gmra.mrb[10].mxu0 %vm263_vm5, %v1149_v26  ;;  %v1338_v40 = vsel %vm149_vm2, %v1333_v35, %v1336_v38 }
 0xbec   :  { %3298 = vmatpush3.bf16.msra.mxu0 %v3912_v5  ;;  %3020 = vmatprep.mubr.msk.f32.mxu0 %vm3760_vm0, %v3761_v1 }
 0xbed   :  { %3299 = vmatprep.subr.bf16.mxu0 %v3759_v0 }
 0xbf0   :  { %3301 = vmatpush3.bf16.msra.mxu0 %v3921_v8 }
 0xbf1   :  { %3302 = vmatprep.subr.bf16.mxu0 %v3759_v0 }
 0xbf4   :  { %3304 = vmatpush3.bf16.msra.mxu0 %v3932_v12 }
 0xbf5   :  { %3317 = vmatprep.subr.bf16.mxu0 %v3759_v0 }
 0xbf7   :  { %3021 = vmatmul.mubr.msk.f32.vlgmr.msra.gmra.mrb[12].mxu0 %vm151_vm3, %v1338_v40 }
 0xbf8   :  { %3319 = vmatpush3.bf16.msra.mxu0 %v4017_v34  ;;  %3050 = vmatprep.mubr.msk.f32.mxu0 %vm3760_vm0, %v3761_v1 }
 0xbf9   :  { %3320 = vmatprep.subr.bf16.mxu0 %v3759_v0 }
 0xbfc   :  { %3322 = vmatpush3.bf16.msra.mxu0 %v4023_v36 }
 0xbfd   :  { %3332 = vmatprep.subr.bf16.mxu0 %v3759_v0 }
 0xcae   :  { %v4171_v41 = vpop.f32.mrb[8].mxu0 }
 0xcaf   :  { %v2962_v42 = vpop.f32.mrb[9].mxu0 }
 0xcbe   :  { %v1219_v44 = vpop.f32.mrb[10].mxu0 }
 0xcbf   :  { %v1220_v45 = vadd.f32 %v3991_v59, %v1219_v44  ;;  %v2996_v46 = vpop.f32.mrb[11].mxu0 }
 0xcc1   :  { %3481 = vtanh.f32 %v1220_v45  ;;  %v2633_v54 = vmul.f32 -1.442695, %v1220_v45 }
 0xcca   :  { %v1408_v48 = vpop.f32.mrb[12].mxu0 }
 0xccb   :  { %v3482_v50 = vpop.eup %3481  ;;  %v1409_v51 = vadd.f32 %v3945_v19, %v1408_v48  ;;  %v3022_v52 = vpop.f32.mrb[13].mxu0 }
 0xccc   :  { %1232 = vrot.lane.b32.xlu1 %v3482_v50, %s3763_s29 }
 0xccd   :  { %3483 = vtanh.f32 %v1409_v51  ;;  %v2637_v55 = vmul.f32 -1.442695, %v1409_v51 }
 0xcce   :  { %3485 = vpow2.f32 %v2633_v54 }
 0xccf   :  { %3487 = vpow2.f32 %v2637_v55 }
 0xcd7   :  { %v3484_v53 = vpop.eup %3483 }
 0xcd8   :  { %1421 = vrot.lane.b32.xlu0 %v3484_v53, %s3763_s29  ;;  %v3486_v57 = vpop.eup %3485 }
 0xcd9   :  { %v1226_v58 = vadd.f32 1.0, %v3486_v57  ;;  %v3488_v60 = vpop.eup %3487 }
 0xcda   :  { %v1415_v61 = vadd.f32 1.0, %v3488_v60 }
 0xcdb   :  { %3489 = vrcp.f32 %v1226_v58 }
 0xcdc   :  { %3491 = vrcp.f32 %v1415_v61 }
 0xce5   :  { %v3490_v62 = vpop.eup %3489 }
 0xce6   :  { %v3492_v3 = vpop.eup %3491  ;;  %v1230_v7 = vmul.f32 %v3490_v62, %v4128_v16 }
 0xce7   :  { %v1419_v11 = vmul.f32 %v3492_v3, %v4132_v21 }
 0xd3e   :  { %v1233_v63 = vpop.permute.xlu1 %1232 }
 0xd3f   :  { %v1235_v2 = vmul.f32 %v3490_v62, %v1233_v63 }
 0xd41   :  { %1237 = vrot.lane.b32.xlu1 %v1235_v2, %s3752_s27 }
 0xd4a   :  { %v1422_v4 = vpop.permute.xlu0 %1421 }
 0xd4b   :  { %v1424_v6 = vmul.f32 %v3492_v3, %v1422_v4 }
 0xd4d   :  { %1426 = vrot.lane.b32.xlu0 %v1424_v6, %s3752_s27 }
 0xdb3   :  { %v1238_v9 = vpop.permute.xlu1 %1237 }
 0xdb4   :  { %v4180_v10 = vadd.f32 %v1238_v9, %v1230_v7 }
 0xdb6   :  { %3493 = vtanh.f32 %v4180_v10 }
 0xdbf   :  { %v1427_v13 = vpop.permute.xlu0 %1426 }
 0xdc0   :  { %v3494_v14 = vpop.eup %3493  ;;  %v4184_v15 = vadd.f32 %v1427_v13, %v1419_v11 }
 0xdc1   :  { %1243 = vrot.lane.b32.xlu1 %v3494_v14, %s3763_s29 }
 0xdc2   :  { %3495 = vtanh.f32 %v4184_v15 }
 0xdcc   :  { %v3496_v17 = vpop.eup %3495 }
 0xdcd   :  { %1432 = vrot.lane.b32.xlu0 %v3496_v17, %s3763_s29 }
 0xe33   :  { %v1244_v18 = vpop.permute.xlu1 %1243 }
 0xe34   :  { %v1246_v16 = vmul.f32 %v3490_v62, %v1244_v18 }
 0xe36   :  { %1248 = vrot.lane.b32.xlu1 %v1246_v16, %s3752_s27 }
 0xe3a   :  { %1440 = vrot.lane.b32.xlu1 %v1246_v16, %s3763_s29 }
 0xe3f   :  { %v1433_v20 = vpop.permute.xlu0 %1432 }
 0xe40   :  { %v1435_v22 = vmul.f32 %v3492_v3, %v1433_v20 }
 0xe42   :  { %1437 = vrot.lane.b32.xlu0 %v1435_v22, %s3752_s27 }
 0xe46   :  { %1629 = vrot.lane.b32.xlu0 %v1435_v22, %s3764_s12  ;;  %v1917_v22 = vld [vmem:[#allocation2 + $0xe] sm:$0x1] }
 0xea8   :  { %v1249_v21 = vpop.permute.xlu1 %1248 }
 0xea9   :  { %3006 = vmatmul.mubr.msk.f32.vlgmr.msra.gmra.mrb[10].mxu1 %vm261_vm4, %v1249_v21  ;;  %v1920_v21 = vrot.slane %v1917_v22, 7 }
 0xeaa   :  { %3307 = vmatpush3.bf16.msra.mxu1 %v3953_v37  ;;  %3039 = vmatprep.mubr.msk.f32.mxu1 %vm3760_vm0, %v3761_v1 }
 0xeab   :  { %3308 = vmatprep.subr.bf16.mxu1 %v3759_v0 }
 0xeac   :  { %v1441_v23 = vpop.permute.xlu1 %1440 }
 0xeae   :  { %3310 = vmatpush3.bf16.msra.mxu1 %v3956_v39 }
 0xeaf   :  { %3311 = vmatprep.subr.bf16.mxu1 %v3759_v0 }
 0xeb2   :  { %3313 = vmatpush3.bf16.msra.mxu1 %v3961_v43 }
 0xeb3   :  { %3314 = vmatprep.subr.bf16.mxu1 %v3759_v0 }
 0xeb4   :  { %v1438_v24 = vpop.permute.xlu0 %1437 }
 0xeb5   :  { %v1443_v25 = vsel %vm261_vm4, %v1438_v24, %v1441_v23  ;;  %v1916_v24 = vld [vmem:[#allocation2 + $0x6] sm:$0x1] }
 0xeb6   :  { %3316 = vmatpush3.bf16.msra.mxu1 %v3966_v47  ;;  %v1921_v23 = vsel %vm142_vm1, %v1920_v21, %v1916_v24 }
 0xeb7   :  { %3323 = vmatprep.subr.bf16.mxu1 %v3759_v0 }
 0xeb8   :  { %v1630_v26 = vpop.permute.xlu0 %1629 }
 0xeb9   :  { %3040 = vmatmul.mubr.msk.f32.vlgmr.msra.gmra.mrb[12].mxu1 %vm263_vm5, %v1443_v25  ;;  %v1632_v32 = vsel %vm149_vm2, %v1627_v31, %v1630_v26 }
 0xeba   :  { %3325 = vmatpush3.bf16.msra.mxu1 %v3912_v5  ;;  %3065 = vmatprep.mubr.msk.f32.mxu1 %vm3760_vm0, %v3761_v1 }
 0xebb   :  { %3326 = vmatprep.subr.bf16.mxu1 %v3759_v0 }
 0xebe   :  { %3328 = vmatpush3.bf16.msra.mxu1 %v3921_v8 }
 0xebf   :  { %3329 = vmatprep.subr.bf16.mxu1 %v3759_v0 }
 0xec2   :  { %3331 = vmatpush3.bf16.msra.mxu1 %v3932_v12 }
 0xec3   :  { %3344 = vmatprep.subr.bf16.mxu1 %v3759_v0 }
 0xec5   :  { %3066 = vmatmul.mubr.msk.f32.vlgmr.msra.gmra.mrb[14].mxu1 %vm151_vm3, %v1632_v32 }
 0xec6   :  { %3346 = vmatpush3.bf16.msra.mxu1 %v4017_v34  ;;  %3095 = vmatprep.mubr.msk.f32.mxu1 %vm3760_vm0, %v3761_v1 }
 0xec7   :  { %3347 = vmatprep.subr.bf16.mxu1 %v3759_v0 }
 0xeca   :  { %3349 = vmatpush3.bf16.msra.mxu1 %v4023_v36 }
 0xecb   :  { %3359 = vmatprep.subr.bf16.mxu1 %v3759_v0 }
 0xf7c   :  { %v4223_v33 = vpop.f32.mrb[10].mxu1 }
 0xf7d   :  { %v3007_v30 = vpop.f32.mrb[11].mxu1 }
 0xf8c   :  { %v1513_v35 = vpop.f32.mrb[12].mxu1 }
 0xf8d   :  { %v1514_v38 = vadd.f32 %v3991_v59, %v1513_v35  ;;  %v3041_v40 = vpop.f32.mrb[13].mxu1 }
 0xf8f   :  { %3497 = vtanh.f32 %v1514_v38  ;;  %v2639_v50 = vmul.f32 -1.442695, %v1514_v38  ;;  %v4281_v38 = vld [vmem:[%s4462_s4] ss:$0 sm:$0xff] }
 0xf98   :  { %v1702_v42 = vpop.f32.mrb[14].mxu1 }
 0xf99   :  { %v3498_v44 = vpop.eup %3497  ;;  %v1703_v45 = vadd.f32 %v3945_v19, %v1702_v42  ;;  %v3067_v46 = vpop.f32.mrb[15].mxu1 }
 0xf9a   :  { %1526 = vrot.lane.b32.xlu1 %v3498_v44, %s3763_s29 }
 0xf9b   :  { %3499 = vtanh.f32 %v1703_v45  ;;  %v2643_v51 = vmul.f32 -1.442695, %v1703_v45 }
 0xf9c   :  { %3501 = vpow2.f32 %v2639_v50 }
 0xf9d   :  { %3503 = vpow2.f32 %v2643_v51 }
 0xfa5   :  { %v3500_v48 = vpop.eup %3499 }
 0xfa6   :  { %1715 = vrot.lane.b32.xlu0 %v3500_v48, %s3763_s29  ;;  %v3502_v52 = vpop.eup %3501 }
 0xfa7   :  { %v1520_v53 = vadd.f32 1.0, %v3502_v52  ;;  %v3504_v54 = vpop.eup %3503 }
 0xfa8   :  { %v1709_v55 = vadd.f32 1.0, %v3504_v54 }
 0xfa9   :  { %3505 = vrcp.f32 %v1520_v53 }
 0xfaa   :  { %3507 = vrcp.f32 %v1709_v55 }
 0xfb3   :  { %v3506_v57 = vpop.eup %3505 }
 0xfb4   :  { %v3508_v19 = vpop.eup %3507  ;;  %v1524_v63 = vmul.f32 %v3506_v57, %v4180_v10 }
 0xfb5   :  { %v1713_v4 = vmul.f32 %v3508_v19, %v4184_v15 }
0x100c   :  { %v1527_v58 = vpop.permute.xlu1 %1526 }
0x100d   :  { %v1529_v60 = vmul.f32 %v3506_v57, %v1527_v58 }
0x100f   :  { %1531 = vrot.lane.b32.xlu1 %v1529_v60, %s3752_s27 }
0x1018   :  { %v1716_v61 = vpop.permute.xlu0 %1715 }
0x1019   :  { %v1718_v62 = vmul.f32 %v3508_v19, %v1716_v61 }
0x101b   :  { %1720 = vrot.lane.b32.xlu0 %v1718_v62, %s3752_s27 }
0x1081   :  { %v1532_v2 = vpop.permute.xlu1 %1531 }
0x1082   :  { %v4232_v3 = vadd.f32 %v1532_v2, %v1524_v63 }
0x1084   :  { %3509 = vtanh.f32 %v4232_v3 }
0x108d   :  { %v1721_v6 = vpop.permute.xlu0 %1720 }
0x108e   :  { %v3510_v7 = vpop.eup %3509  ;;  %v4236_v9 = vadd.f32 %v1721_v6, %v1713_v4 }
0x108f   :  { %1537 = vrot.lane.b32.xlu1 %v3510_v7, %s3763_s29 }
0x1090   :  { %3511 = vtanh.f32 %v4236_v9 }
0x109a   :  { %v3512_v11 = vpop.eup %3511 }
0x109b   :  { %1726 = vrot.lane.b32.xlu0 %v3512_v11, %s3763_s29 }
0x1101   :  { %v1538_v13 = vpop.permute.xlu1 %1537 }
0x1102   :  { %v1540_v10 = vmul.f32 %v3506_v57, %v1538_v13 }
0x1104   :  { %1542 = vrot.lane.b32.xlu1 %v1540_v10, %s3752_s27 }
0x1108   :  { %1734 = vrot.lane.b32.xlu1 %v1540_v10, %s3763_s29 }
0x110d   :  { %v1727_v14 = vpop.permute.xlu0 %1726 }
0x110e   :  { %v1729_v17 = vmul.f32 %v3508_v19, %v1727_v14 }
0x1110   :  { %1731 = vrot.lane.b32.xlu0 %v1729_v17, %s3752_s27 }
0x1114   :  { %1923 = vrot.lane.b32.xlu0 %v1729_v17, %s3764_s12 }
0x1176   :  { %v1543_v15 = vpop.permute.xlu1 %1542 }
0x1177   :  { %3051 = vmatmul.mubr.msk.f32.vlgmr.msra.gmra.mrb[14].mxu0 %vm261_vm4, %v1543_v15  ;;  %v2211_v15 = vld [vmem:[#allocation2 + $0xf] sm:$0x1] }
0x1178   :  { %3334 = vmatpush3.bf16.msra.mxu0 %v3953_v37  ;;  %3084 = vmatprep.mubr.msk.f32.mxu0 %vm3760_vm0, %v3761_v1 }
0x1179   :  { %3335 = vmatprep.subr.bf16.mxu0 %v3759_v0 }
0x117a   :  { %v1735_v16 = vpop.permute.xlu1 %1734 }
0x117c   :  { %3337 = vmatpush3.bf16.msra.mxu0 %v3956_v39 }
0x117d   :  { %3338 = vmatprep.subr.bf16.mxu0 %v3759_v0 }
0x1180   :  { %3340 = vmatpush3.bf16.msra.mxu0 %v3961_v43 }
0x1181   :  { %3341 = vmatprep.subr.bf16.mxu0 %v3759_v0 }
0x1182   :  { %v1732_v18 = vpop.permute.xlu0 %1731 }
0x1183   :  { %v1737_v20 = vsel %vm261_vm4, %v1732_v18, %v1735_v16  ;;  %v2214_v18 = vrot.slane %v2211_v15, 7  ;;  %v2210_v16 = vld [vmem:[#allocation2 + $0x7] sm:$0x1] }
0x1184   :  { %3343 = vmatpush3.bf16.msra.mxu0 %v3966_v47 }
0x1185   :  { %3350 = vmatprep.subr.bf16.mxu0 %v3759_v0 }
0x1186   :  { %v1924_v25 = vpop.permute.xlu0 %1923 }
0x1187   :  { %3085 = vmatmul.mubr.msk.f32.vlgmr.msra.gmra.mrb[16].mxu0 %vm263_vm5, %v1737_v20  ;;  %v1926_v27 = vsel %vm149_vm2, %v1921_v23, %v1924_v25  ;;  %v2215_v20 = vsel %vm142_vm1, %v2214_v18, %v2210_v16 }
0x1188   :  { %3352 = vmatpush3.bf16.msra.mxu0 %v3912_v5  ;;  %3110 = vmatprep.mubr.msk.f32.mxu0 %vm3760_vm0, %v3761_v1 }
0x1189   :  { %3353 = vmatprep.subr.bf16.mxu0 %v3759_v0 }
0x118c   :  { %3355 = vmatpush3.bf16.msra.mxu0 %v3921_v8 }
0x118d   :  { %3356 = vmatprep.subr.bf16.mxu0 %v3759_v0 }
0x1190   :  { %3358 = vmatpush3.bf16.msra.mxu0 %v3932_v12 }
0x1191   :  { %3371 = vmatprep.subr.bf16.mxu0 %v3759_v0 }
0x1193   :  { %3111 = vmatmul.mubr.msk.f32.vlgmr.msra.gmra.mrb[18].mxu0 %vm151_vm3, %v1926_v27 }
0x1194   :  { %3373 = vmatpush3.bf16.msra.mxu0 %v4017_v34  ;;  %3140 = vmatprep.mubr.msk.f32.mxu0 %vm3760_vm0, %v3761_v1 }
0x1195   :  { %3374 = vmatprep.subr.bf16.mxu0 %v3759_v0 }
0x1198   :  { %3376 = vmatpush3.bf16.msra.mxu0 %v4023_v36 }
0x1199   :  { %3386 = vmatprep.subr.bf16.mxu0 %v3759_v0 }
0x124a   :  { %v4275_v28 = vpop.f32.mrb[14].mxu0 }
0x124b   :  { %v3052_v29 = vpop.f32.mrb[15].mxu0 }
0x125a   :  { %v1807_v31 = vpop.f32.mrb[16].mxu0 }
0x125b   :  { %v1808_v26 = vadd.f32 %v3991_v59, %v1807_v31  ;;  %v3086_v32 = vpop.f32.mrb[17].mxu0 }
0x125d   :  { %3513 = vtanh.f32 %v1808_v26  ;;  %v2645_v45 = vmul.f32 -1.442695, %v1808_v26 }
0x1266   :  { %v1996_v30 = vpop.f32.mrb[18].mxu0 }
0x1267   :  { %v3514_v35 = vpop.eup %3513  ;;  %v1997_v40 = vadd.f32 %v4281_v38, %v1996_v30  ;;  %v3112_v42 = vpop.f32.mrb[19].mxu0 }
0x1268   :  { %1820 = vrot.lane.b32.xlu1 %v3514_v35, %s3763_s29 }
0x1269   :  { %3515 = vtanh.f32 %v1997_v40  ;;  %v2649_v59 = vmul.f32 -1.442695, %v1997_v40 }
0x126a   :  { %3517 = vpow2.f32 %v2645_v45 }
0x126b   :  { %3519 = vpow2.f32 %v2649_v59 }
0x1273   :  { %v3516_v44 = vpop.eup %3515 }
0x1274   :  { %2009 = vrot.lane.b32.xlu0 %v3516_v44, %s3763_s29  ;;  %v3518_v46 = vpop.eup %3517 }
0x1275   :  { %v1814_v48 = vadd.f32 1.0, %v3518_v46  ;;  %v3520_v50 = vpop.eup %3519 }
0x1276   :  { %v2003_v51 = vadd.f32 1.0, %v3520_v50 }
0x1277   :  { %3521 = vrcp.f32 %v1814_v48 }
0x1278   :  { %3523 = vrcp.f32 %v2003_v51 }
0x1281   :  { %v3522_v52 = vpop.eup %3521 }
0x1282   :  { %v3524_v55 = vpop.eup %3523  ;;  %v1818_v60 = vmul.f32 %v3522_v52, %v4232_v3 }
0x1283   :  { %v2007_v62 = vmul.f32 %v3524_v55, %v4236_v9 }
0x12da   :  { %v1821_v53 = vpop.permute.xlu1 %1820 }
0x12db   :  { %v1823_v54 = vmul.f32 %v3522_v52, %v1821_v53 }
0x12dd   :  { %1825 = vrot.lane.b32.xlu1 %v1823_v54, %s3752_s27 }
0x12e6   :  { %v2010_v57 = vpop.permute.xlu0 %2009 }
0x12e7   :  { %v2012_v58 = vmul.f32 %v3524_v55, %v2010_v57 }
0x12e9   :  { %2014 = vrot.lane.b32.xlu0 %v2012_v58, %s3752_s27 }
0x134f   :  { %v1826_v19 = vpop.permute.xlu1 %1825 }
0x1350   :  { %v4289_v61 = vadd.f32 %v1826_v19, %v1818_v60 }
0x1352   :  { %3525 = vtanh.f32 %v4289_v61 }
0x135b   :  { %v2015_v63 = vpop.permute.xlu0 %2014 }
0x135c   :  { %v3526_v2 = vpop.eup %3525  ;;  %v4293_v4 = vadd.f32 %v2015_v63, %v2007_v62 }
0x135d   :  { %1831 = vrot.lane.b32.xlu1 %v3526_v2, %s3763_s29 }
0x135e   :  { %3527 = vtanh.f32 %v4293_v4 }
0x1368   :  { %v3528_v6 = vpop.eup %3527 }
0x1369   :  { %2020 = vrot.lane.b32.xlu0 %v3528_v6, %s3763_s29 }
0x13cf   :  { %v1832_v7 = vpop.permute.xlu1 %1831 }
0x13d0   :  { %v1834_v3 = vmul.f32 %v3522_v52, %v1832_v7 }
0x13d2   :  { %1836 = vrot.lane.b32.xlu1 %v1834_v3, %s3752_s27 }
0x13d6   :  { %2028 = vrot.lane.b32.xlu1 %v1834_v3, %s3763_s29 }
0x13db   :  { %v2021_v11 = vpop.permute.xlu0 %2020 }
0x13dc   :  { %v2023_v13 = vmul.f32 %v3524_v55, %v2021_v11 }
0x13de   :  { %2025 = vrot.lane.b32.xlu0 %v2023_v13, %s3752_s27 }
0x13e2   :  { %2217 = vrot.lane.b32.xlu0 %v2023_v13, %s3764_s12 }
0x1444   :  { %v1837_v9 = vpop.permute.xlu1 %1836 }
0x1445   :  { %3096 = vmatmul.mubr.msk.f32.vlgmr.msra.gmra.mrb[16].mxu1 %vm261_vm4, %v1837_v9 }
0x1446   :  { %3361 = vmatpush3.bf16.msra.mxu1 %v3953_v37  ;;  %3129 = vmatprep.mubr.msk.f32.mxu1 %vm3760_vm0, %v3761_v1 }
0x1447   :  { %3362 = vmatprep.subr.bf16.mxu1 %v3759_v0 }
0x1448   :  { %v2029_v14 = vpop.permute.xlu1 %2028 }
0x144a   :  { %3364 = vmatpush3.bf16.msra.mxu1 %v3956_v39 }
0x144b   :  { %3365 = vmatprep.subr.bf16.mxu1 %v3759_v0 }
0x144e   :  { %3367 = vmatpush3.bf16.msra.mxu1 %v3961_v43 }
0x144f   :  { %3368 = vmatprep.subr.bf16.mxu1 %v3759_v0 }
0x1450   :  { %v2026_v10 = vpop.permute.xlu0 %2025 }
0x1451   :  { %v2031_v17 = vsel %vm261_vm4, %v2026_v10, %v2029_v14  ;;  %v4373_v14 = vld [vmem:[%s4466_s8] ss:$0 sm:$0xff]  ;;  %s3765_s8 = smov 24  }
0x1452   :  { %3370 = vmatpush3.bf16.msra.mxu1 %v3966_v47  ;;  %v1319_v18 = vadd.f32 %v4373_v14, %v4223_v33 }
0x1453   :  { %3377 = vmatprep.subr.bf16.mxu1 %v3759_v0 }
0x1454   :  { %v2218_v22 = vpop.permute.xlu0 %2217  ;;  %v2635_v16 = vmul.f32 -1.442695, %v1319_v18 }
0x1455   :  { %3130 = vmatmul.mubr.msk.f32.vlgmr.msra.gmra.mrb[18].mxu1 %vm263_vm5, %v2031_v17  ;;  %v731_v17 = vadd.f32 %v4373_v14, %v4119_v49 }
0x1456   :  { %3379 = vmatpush3.bf16.msra.mxu1 %v3912_v5  ;;  %3155 = vmatprep.mubr.msk.f32.mxu1 %vm3760_vm0, %v3761_v1  ;;  %v2220_v5 = vsel %vm149_vm2, %v2215_v20, %v2218_v22 }
0x1457   :  { %3380 = vmatprep.subr.bf16.mxu1 %v3759_v0  ;;  %v2623_v15 = vmul.f32 -1.442695, %v731_v17 }
0x145a   :  { %3382 = vmatpush3.bf16.msra.mxu1 %v3921_v8 }
0x145b   :  { %3383 = vmatprep.subr.bf16.mxu1 %v3759_v0 }
0x145e   :  { %3385 = vmatpush3.bf16.msra.mxu1 %v3932_v12  ;;  %v4336_v12 = vld [vmem:[%s4464_s6] ss:$0 sm:$0xff] }
0x145f   :  { %3398 = vmatprep.subr.bf16.mxu1 %v3759_v0 }
0x1461   :  { %3156 = vmatmul.mubr.msk.f32.vlgmr.msra.gmra.mrb[20].mxu1 %vm151_vm3, %v2220_v5 }
0x1462   :  { %3400 = vmatpush3.bf16.msra.mxu1 %v4017_v34  ;;  %3185 = vmatprep.mubr.msk.f32.mxu1 %vm3760_vm0, %v3761_v1 }
0x1463   :  { %3401 = vmatprep.subr.bf16.mxu1 %v3759_v0 }
0x1466   :  { %3403 = vmatpush3.bf16.msra.mxu1 %v4023_v36 }
0x1518   :  { %v4331_v8 = vpop.f32.mrb[16].mxu1 }
0x1519   :  { %v3097_v21 = vpop.f32.mrb[17].mxu1  ;;  %v1907_v20 = vadd.f32 %v4373_v14, %v4331_v8 }
0x151b   :  { %v2647_v22 = vmul.f32 -1.442695, %v1907_v20 }
0x1528   :  { %v2101_v24 = vpop.f32.mrb[18].mxu1 }
0x1529   :  { %v2102_v23 = vadd.f32 %v4336_v12, %v2101_v24  ;;  %v3131_v25 = vpop.f32.mrb[19].mxu1 }
0x152b   :  { %3529 = vtanh.f32 %v2102_v23  ;;  %v2651_v26 = vmul.f32 -1.442695, %v2102_v23 }
0x1534   :  { %v2290_v34 = vpop.f32.mrb[20].mxu1 }
0x1535   :  { %v3530_v27 = vpop.eup %3529  ;;  %v2291_v29 = vadd.f32 %v4281_v38, %v2290_v34  ;;  %v3157_v31 = vpop.f32.mrb[21].mxu1 }
0x1536   :  { %2114 = vrot.lane.b32.xlu1 %v3530_v27, %s3763_s29 }
0x1537   :  { %3531 = vtanh.f32 %v2291_v29  ;;  %v2655_v32 = vmul.f32 -1.442695, %v2291_v29 }
0x1538   :  { %3533 = vpow2.f32 %v2651_v26 }
0x1539   :  { %3535 = vpow2.f32 %v2655_v32  ;;  %v1613_v32 = vadd.f32 %v4373_v14, %v4275_v28 }
0x1541   :  { %v3532_v36 = vpop.eup %3531 }
0x1542   :  { %2303 = vrot.lane.b32.xlu0 %v3532_v36, %s3763_s29  ;;  %v3534_v30 = vpop.eup %3533  ;;  %v1025_v36 = vadd.f32 %v4373_v14, %v4171_v41 }
0x1543   :  { %v2108_v35 = vadd.f32 1.0, %v3534_v30  ;;  %v3536_v40 = vpop.eup %3535  ;;  %v2641_v30 = vmul.f32 -1.442695, %v1613_v32 }
0x1544   :  { %v2297_v42 = vadd.f32 1.0, %v3536_v40  ;;  %v2629_v26 = vmul.f32 -1.442695, %v1025_v36 }
0x1545   :  { %3537 = vrcp.f32 %v2108_v35 }
0x1546   :  { %3539 = vrcp.f32 %v2297_v42 }
0x154f   :  { %v3538_v44 = vpop.eup %3537 }
0x1550   :  { %v3540_v38 = vpop.eup %3539  ;;  %v2112_v50 = vmul.f32 %v3538_v44, %v4289_v61 }
0x1551   :  { %v2301_v53 = vmul.f32 %v3540_v38, %v4293_v4 }
0x15a8   :  { %v2115_v45 = vpop.permute.xlu1 %2114 }
0x15a9   :  { %v2117_v59 = vmul.f32 %v3538_v44, %v2115_v45 }
0x15ab   :  { %2119 = vrot.lane.b32.xlu1 %v2117_v59, %s3752_s27 }
0x15b4   :  { %v2304_v46 = vpop.permute.xlu0 %2303 }
0x15b5   :  { %v2306_v48 = vmul.f32 %v3540_v38, %v2304_v46 }
0x15b7   :  { %2308 = vrot.lane.b32.xlu0 %v2306_v48, %s3752_s27 }
0x161d   :  { %v2120_v51 = vpop.permute.xlu1 %2119 }
0x161e   :  { %v2122_v52 = vadd.f32 %v2120_v51, %v2112_v50 }
0x1620   :  { %3541 = vtanh.f32 %v2122_v52 }
0x1629   :  { %v2309_v54 = vpop.permute.xlu0 %2308 }
0x162a   :  { %v3542_v55 = vpop.eup %3541  ;;  %v4346_v57 = vadd.f32 %v2309_v54, %v2301_v53 }
0x162b   :  { %2125 = vrot.lane.b32.xlu1 %v3542_v55, %s3763_s29 }
0x162c   :  { %3543 = vtanh.f32 %v4346_v57 }
0x1636   :  { %v3544_v58 = vpop.eup %3543 }
0x1637   :  { %2314 = vrot.lane.b32.xlu0 %v3544_v58, %s3763_s29 }
0x169d   :  { %v2126_v60 = vpop.permute.xlu1 %2125 }
0x169e   :  { %v2128_v19 = vmul.f32 %v3538_v44, %v2126_v60 }
0x16a0   :  { %2130 = vrot.lane.b32.xlu1 %v2128_v19, %s3752_s27 }
0x16a4   :  { %2322 = vrot.lane.b32.xlu1 %v2128_v19, %s3763_s29 }
0x16a9   :  { %v2315_v61 = vpop.permute.xlu0 %2314 }
0x16aa   :  { %v2317_v62 = vmul.f32 %v3540_v38, %v2315_v61 }
0x16ac   :  { %2319 = vrot.lane.b32.xlu0 %v2317_v62, %s3752_s27 }
0x1712   :  { %v2131_v63 = vpop.permute.xlu1 %2130 }
0x1713   :  { %3141 = vmatmul.mubr.msk.f32.vlgmr.msra.gmra.mrb[20].mxu0 %vm261_vm4, %v2131_v63 }
0x1714   :  { %3388 = vmatpush3.bf16.msra.mxu0 %v3953_v37  ;;  %3174 = vmatprep.mubr.msk.f32.mxu0 %vm3760_vm0, %v3761_v1 }
0x1715   :  { %3389 = vmatprep.subr.bf16.mxu0 %v3759_v0 }
0x1716   :  { %v2323_v37 = vpop.permute.xlu1 %2322 }
0x1718   :  { %3391 = vmatpush3.bf16.msra.mxu0 %v3956_v39 }
0x1719   :  { %3392 = vmatprep.subr.bf16.mxu0 %v3759_v0 }
0x171c   :  { %3394 = vmatpush3.bf16.msra.mxu0 %v3961_v43 }
0x171d   :  { %3395 = vmatprep.subr.bf16.mxu0 %v3759_v0 }
0x171e   :  { %v2320_v2 = vpop.permute.xlu0 %2319 }
0x171f   :  { %2546 = vst.msk [vmem:[#allocation11] sm:$0x3] %vm2545_vm6, %v2320_v2  ;;  %v2325_v4 = vsel %vm261_vm4, %v2320_v2, %v2323_v37 }
0x1720   :  { %3397 = vmatpush3.bf16.msra.mxu0 %v3966_v47 }
0x1723   :  { %3175 = vmatmul.mubr.msk.f32.vlgmr.msra.gmra.mrb[22].mxu0 %vm263_vm5, %v2325_v4 }
0x17e6   :  { %v2200_v1 = vpop.f32.mrb[20].mxu0 }
0x17e7   :  { %v3142_v6 = vpop.f32.mrb[21].mxu0  ;;  %v2201_v35 = vadd.f32 %v4373_v14, %v2200_v1 }
0x17e9   :  { %v2653_v40 = vmul.f32 -1.442695, %v2201_v35 }
0x17f6   :  { %v2395_v39 = vpop.f32.mrb[22].mxu0 }
0x17f7   :  { %v2396_v7 = vadd.f32 %v4336_v12, %v2395_v39  ;;  %v3176_v3 = vpop.f32.mrb[23].mxu0 }
0x17f9   :  { %3545 = vtanh.f32 %v2396_v7  ;;  %v2657_v0 = vmul.f32 -1.442695, %v2396_v7 }
0x17fb   :  { %3547 = vpow2.f32 %v2657_v0 }
0x1803   :  { %v3546_v43 = vpop.eup %3545 }
0x1804   :  { %2408 = vrot.lane.b32.xlu0 %v3546_v43, %s3763_s29 }
0x1805   :  { %v3548_v11 = vpop.eup %3547 }
0x1806   :  { %v2402_v13 = vadd.f32 1.0, %v3548_v11 }
0x1808   :  { %3549 = vrcp.f32 %v2402_v13 }
0x1809   :  { %3551 = vpow2.f32 %v2623_v15 }
0x180a   :  { %3553 = vpow2.f32 %v2635_v16 }
0x180b   :  { %3555 = vpow2.f32 %v2647_v22 }
0x1812   :  { %v3550_v47 = vpop.eup %3549 }
0x1813   :  { %v2406_v5 = vmul.f32 %v3550_v47, %v2122_v52  ;;  %v3552_v21 = vpop.eup %3551  ;;  %v437_v52 = vadd.f32 %v4373_v14, %v4067_v56 }
0x1814   :  { %v737_v23 = vadd.f32 1.0, %v3552_v21  ;;  %v3554_v49 = vpop.eup %3553 }
0x1815   :  { %v1325_v25 = vadd.f32 1.0, %v3554_v49  ;;  %v3556_v33 = vpop.eup %3555  ;;  %v2617_v53 = vmul.f32 -1.442695, %v437_v52 }
0x1816   :  { %v1913_v34 = vadd.f32 1.0, %v3556_v33 }
0x1876   :  { %v2409_v9 = vpop.permute.xlu0 %2408 }
0x1877   :  { %v2411_v10 = vmul.f32 %v3550_v47, %v2409_v9 }
0x1879   :  { %2413 = vrot.lane.b32.xlu1 %v2411_v10, %s3752_s27 }
0x18eb   :  { %v2414_v24 = vpop.permute.xlu1 %2413 }
0x18ec   :  { %v4381_v12 = vadd.f32 %v2414_v24, %v2406_v5 }
0x18ee   :  { %3557 = vtanh.f32 %v4381_v12 }
0x18ef   :  { %3559 = vrcp.f32 %v737_v23 }
0x18f0   :  { %3561 = vrcp.f32 %v1325_v25 }
0x18f1   :  { %3563 = vrcp.f32 %v1913_v34 }
0x18f2   :  { %3565 = vpow2.f32 %v2629_v26 }
0x18f3   :  { %3567 = vpow2.f32 %v2641_v30 }
0x18f4   :  { %3569 = vpow2.f32 %v2653_v40 }
0x18f8   :  { %v3558_v27 = vpop.eup %3557 }
0x18f9   :  { %2419 = vrot.lane.b32.xlu0 %v3558_v27, %s3763_s29  ;;  %v3560_v8 = vpop.eup %3559 }
0x18fa   :  { %v3562_v29 = vpop.eup %3561 }
0x18fb   :  { %v3564_v31 = vpop.eup %3563 }
0x18fc   :  { %v3566_v42 = vpop.eup %3565 }
0x18fd   :  { %2505 = vrot.lane.b32.xlu0 %v3560_v8, %s3756_s18  ;;  %v1031_v44 = vadd.f32 1.0, %v3566_v42  ;;  %v3568_v45 = vpop.eup %3567  ;;  %s3767_s18 = smov 96  }
0x18fe   :  { %v1619_v59 = vadd.f32 1.0, %v3568_v45  ;;  %v3570_v38 = vpop.eup %3569 }
0x18ff   :  { %3571 = vrcp.f32 %v1031_v44  ;;  %v2207_v46 = vadd.f32 1.0, %v3570_v38 }
0x1900   :  { %3573 = vrcp.f32 %v1619_v59 }
0x1901   :  { %2513 = vrot.lane.b32.xlu0 %v3562_v29, %s3765_s8  ;;  %3575 = vrcp.f32 %v2207_v46 }
0x1902   :  { %3577 = vpow2.f32 %v2617_v53 }
0x1905   :  { %2521 = vrot.lane.b32.xlu0 %v3564_v31, %s3766_s22 }
0x1909   :  { %v3572_v28 = vpop.eup %3571 }
0x190a   :  { %v3574_v50 = vpop.eup %3573 }
0x190b   :  { %v3576_v51 = vpop.eup %3575 }
0x190c   :  { %v3578_v54 = vpop.eup %3577 }
0x190d   :  { %v443_v55 = vadd.f32 1.0, %v3578_v54 }
0x190f   :  { %3579 = vrcp.f32 %v443_v55 }
0x1919   :  { %v3580_v19 = vpop.eup %3579 }
0x196b   :  { %v2420_v41 = vpop.permute.xlu0 %2419 }
0x196c   :  { %v2422_v48 = vmul.f32 %v3550_v47, %v2420_v41 }
0x196e   :  { %2424 = vrot.lane.b32.xlu1 %v2422_v48, %s3752_s27 }
0x196f   :  { %v2506_v58 = vpop.permute.xlu0 %2505 }
0x1970   :  { %v2533_v61 = vsel %vm2532_vm7, %v3580_v19, %v2506_v58 }
0x1972   :  { %2509 = vrot.lane.b32.xlu1 %v3572_v28, %s3762_s17  ;;  %s3768_s17 = smov [#allocation11]  }
0x1973   :  { %v2514_v63 = vpop.permute.xlu0 %2513  ;;  %s2576_s23 = sshll.u32 %s3768_s17, 4  ;;  %s2577_s23 = int_to_ptr.vmem [resolvable:$true] %s2576_s23 }
0x1974   :  { %s3675_s24 = scalar_lea.vmem %s2577_s23, 64  ;;  %p3680_p5 = scmp.lt.s32.totalorder %s2577_s23, %s2577_s23 }
0x1975   :  { %p3676_p4 = scmp.ne.s32.totalorder %s2577_s23, %s3675_s24  ;;  %p3681_p6 = scmp.lt.s32.totalorder %s3675_s24, %s3675_s24 }
0x1976   :  { %2517 = vrot.lane.b32.xlu1 %v3574_v50, %s3752_s27 }
0x1977   :  { %v2522_v4 = vpop.permute.xlu0 %2521  ;;  %p3682_p7 = por %p3681_p6, %p3680_p5 }
0x1979   :  { %p3683_p8 = pnand %p3682_p7, %p3676_p4 }
0x197a   :  { %2525 = vrot.lane.b32.xlu1 %v3576_v51, %s3764_s12 }
0x197e   :  { %2548 = vrot.lane.b32.xlu1 %v4346_v57, %s3767_s18 }
0x19e0   :  { %v2425_v60 = vpop.permute.xlu1 %2424 }
0x19e1   :  { %2554 = vst.msk [vmem:[#allocation11 + $0x2] sm:$0x3] %vm2545_vm6, %v2425_v60  ;;  %3186 = vmatmul.mubr.msk.f32.vlgmr.msra.gmra.mrb[22].mxu1 %vm261_vm4, %v2425_v60 }
0x19e4   :  { %v2510_v62 = vpop.permute.xlu1 %2509 }
0x19e5   :  { %v2534_v57 = vsel %vm149_vm2, %v2533_v61, %v2510_v62 }
0x19e6   :  { %v2536_v2 = vsel %vm2535_vm8, %v2534_v57, %v2514_v63 }
0x19e8   :  { %v2518_v56 = vpop.permute.xlu1 %2517 }
0x19e9   :  { %v2537_v37 = vsel %vm261_vm4, %v2536_v2, %v2518_v56 }
0x19ea   :  { %v2539_v6 = vsel %vm2538_vm9, %v2537_v37, %v2522_v4 }
0x19ec   :  { %v2526_v1 = vpop.permute.xlu1 %2525 }
0x19ed   :  { %v2540_v39 = vsel %vm151_vm3, %v2539_v6, %v2526_v1 }
0x19f0   :  { %v2549_v7 = vpop.permute.xlu1 %2548 }
0x19f1   :  { %2551 = vst.msk [vmem:[#allocation13] sm:$0x3] %vm2545_vm6, %v2549_v7 }
0x1ab4   :  { %v2494_v3 = vpop.f32.mrb[22].mxu1 }
0x1ab5   :  { %v2495_v43 = vadd.f32 %v4373_v14, %v2494_v3  ;;  %v3187_v0 = vpop.f32.mrb[23].mxu1 }
0x1ab7   :  { %v2659_v11 = vmul.f32 -1.442695, %v2495_v43 }
0x1ab9   :  { %3581 = vpow2.f32 %v2659_v11 }
0x1ac3   :  { %v3582_v13 = vpop.eup %3581 }
0x1ac4   :  { %v2501_v47 = vadd.f32 1.0, %v3582_v13 }
0x1ac6   :  { %3583 = vrcp.f32 %v2501_v47 }
0x1ac7   :  { %3686 = shalt.err (!%p3683_p8)
}
0x1ac8   :  { %s3687_s29 = scalar_lea.hbm %s4468_s10, 64 }
0x1ac9   :  { %p3688_p9 = scmp.ne.s32.totalorder %s4468_s10, %s3687_s29  ;;  %p3691_p10 = scmp.lt.u32.totalorder %s3687_s29, %s4468_s10 }
0x1acb   :  { %p3693_p11 = pnand %p3691_p10, %p3688_p9 }
0x1acd   :  { %3696 = shalt.err (!%p3693_p11)
}
0x1ace   :  { %2582 = dma.vmem_to_hbm [thread:$0]  %s2577_s23, 64, %s4468_s10, [#allocation12], %s3752_s27, %s3752_s27, %s3753_s28   ;;  %vm2541_vm10 = vcmask 457728   ;;  %vm2543_vm11 = vcmask 517120  }
0x1acf   :  { %s3769_s1 = smov 56   ;;  %s3770_s30 = smov [#allocation10]  }
0x1ad0   :  { %v3584_v9 = vpop.eup %3583  ;;  %s2567_s16 = sshll.u32 %s3770_s30, 4  ;;  %s3771_s19 = smov [#allocation13]   ;;  %s2568_s16 = int_to_ptr.vmem [resolvable:$true] %s2567_s16 }
0x1ad1   :  { %2529 = vrot.lane.b32.xlu0 %v3584_v9, %s3769_s1  ;;  %s2588_s20 = sshll.u32 %s3771_s19, 4  ;;  %s3697_s7 = scalar_lea.vmem %s2568_s16, 32  ;;  %s4423_s20 = int_to_ptr.vmem [resolvable:$true] %s2588_s20 }
0x1ad2   :  { %p3698_p12 = scmp.ne.s32.totalorder %s2568_s16, %s3697_s7  ;;  %p3702_p13 = scmp.lt.s32.totalorder %s2568_s16, %s2568_s16 }
0x1ad3   :  { %p3703_p0 = scmp.lt.s32.totalorder %s3697_s7, %s3697_s7 }
0x1ad5   :  { %2556 = vrot.lane.b32.xlu0 %v4381_v12, %s3767_s18  ;;  %p3704_p1 = por %p3703_p0, %p3702_p13 }
0x1ad7   :  { %p3705_p2 = pnand %p3704_p1, %p3698_p12 }
0x1b43   :  { %v2530_v10 = vpop.permute.xlu0 %2529 }
0x1b44   :  { %v2542_v14 = vsel %vm2541_vm10, %v2540_v39, %v2530_v10 }
0x1b45   :  { %2544 = vst.msk [vmem:[#allocation10] sm:$0x3] %vm2543_vm11, %v2542_v14 }
0x1b46   :  { %3708 = shalt.err (!%p3705_p2)
}
0x1b47   :  { %s3709_s4 = scalar_lea.hbm %s4467_s9, 32 }
0x1b48   :  { %p3710_p3 = scmp.ne.s32.totalorder %s4467_s9, %s3709_s4  ;;  %p3713_p4 = scmp.lt.u32.totalorder %s3709_s4, %s4467_s9 }
0x1b4a   :  { %p3715_p5 = pnand %p3713_p4, %p3710_p3 }
0x1b4c   :  { %3718 = shalt.err (!%p3715_p5)
}
0x1b4d   :  { %2570 = dma.vmem_to_hbm [thread:$0]  %s2568_s16, 32, %s4467_s9, [#allocation4]   ;;  %v2557_v17 = vpop.permute.xlu0 %2556 }
0x1b4e   :  { %2560 = vst.msk [vmem:[#allocation13 + $0x2] sm:$0x3] %vm2545_vm6, %v2557_v17  ;;  %s3719_s17 = scalar_lea.vmem %s4423_s20, 64  ;;  %p3724_p7 = scmp.lt.s32.totalorder %s4423_s20, %s4423_s20 }
0x1b4f   :  { %p3720_p6 = scmp.ne.s32.totalorder %s4423_s20, %s3719_s17  ;;  %p3725_p8 = scmp.lt.s32.totalorder %s3719_s17, %s3719_s17 }
0x1b51   :  { %p3726_p9 = por %p3725_p8, %p3724_p7 }
0x1b53   :  { %p3727_p10 = pnand %p3726_p9, %p3720_p6 }
0x1b55   :  { %3730 = shalt.err (!%p3727_p10)
}
0x1b56   :  { %s3731_s3 = scalar_lea.hbm %s4469_s11, 64 }
0x1b57   :  { %p3732_p11 = scmp.ne.s32.totalorder %s4469_s11, %s3731_s3  ;;  %p3735_p12 = scmp.lt.u32.totalorder %s3731_s3, %s4469_s11 }
0x1b59   :  { %p3737_p13 = pnand %p3735_p12, %p3732_p11 }
0x1b5b   :  { %3740 = shalt.err (!%p3737_p13)
}
0x1b5c   :  { %2594 = dma.vmem_to_hbm [thread:$0]  %s4423_s20, 64, %s4469_s11, [#allocation12], %s3752_s27, %s3752_s27, %s3753_s28  }
0x1b5d   :  { %3747 = dma.done.wait [#allocation4], 32  }
0x1b5e   :  { %3748 = vsyncadd [#allocation4], 4294967264 }
0x1b5f   :  { %3749 = dma.done.wait [#allocation12], 128  }
0x1b60   :  { %3750 = vsyncadd [#allocation12], 4294967168 }
0x1b61   :  { %2604 = vsyncpa [#allocation3], 1 }
0x1b62   :  { %2605 = vsyncpa [#allocation6], 1 }
0x1b63   :  { %2606 = vsyncpa [#allocation9], 1 }
0x1b64   :  { %2607 = vsyncpa [#allocation4], 1 }
0x1b65   :  { %2608 = vsyncpa [#allocation12], 1 }

</bundles_post_ra>
